<compile_context>
chip_gen: v7x
topology: tpu7x:2x2x1
jax: 0.10.0
libtpu: 0.0.40
codegen_flags: <defaults>
</compile_context>

<pallas_src>
import math
from functools import partial

import numpy as np
import jax
import jax.numpy as jnp
from jax import lax
from jax.experimental import pallas as pl
from jax.experimental.pallas import tpu as pltpu  # noqa: F401  (TPU backend assumed)
from jax.scipy import linalg as jsl

F32 = jnp.float32
BF16 = jnp.bfloat16
EPS = 1e-5
SQRT1_2 = 1.0 / math.sqrt(2.0)


def _gelu_exact(x):
    # matches torch.nn.GELU() default (erf form)
    return 0.5 * x * (1.0 + lax.erf(x * SQRT1_2))


# ----------------------------- fused Pallas kernel -----------------------------

def _fused_kernel(static_cfg, *refs):
    """Entire ModernTCN forward_feature in one kernel.

    Activation layout throughout: channels-last rows, shape (B*N_i, M*D_i) with
    channel index c = m*D + d.  All structural rearrangements (patch permute, conv
    time shifts with per-batch zero padding, stride-r downsample) are constant 0/1
    matrices applied with jnp.dot, so the kernel is pure MXU + VPU work.
    """
    M, r, num_blocks, large = static_cfg
    num_stage = len(num_blocks)
    ins, out_ref = refs[:-1], refs[-1]
    it = iter(ins)

    x_ref = next(it)      # (B*M*P, ps)   f32   rows ordered (b, m, p)  -- pure reshape of x
    S_ref = next(it)      # (M, B*P, B*M*P) f32 patch-permute selection matrices
    Wst_ref = next(it)    # (M, ps, C1)   bf16  stem conv (BN folded), placed in col slab m
    bst_ref = next(it)    # (1, C1)       f32

    # ---- stem: h[b*P+p, m*D0+d] = sum_k x[b,m,p*ps+k] * Wf[k,d] + bf[d] ----
    x = x_ref[...]
    h = None
    for m in range(M):
        rows_m = jnp.dot(S_ref[m], x, preferred_element_type=F32)            # (R1, ps)
        term = jnp.dot(rows_m.astype(BF16), Wst_ref[m],
                       preferred_element_type=F32)                            # (R1, C1)
        h = term if h is None else h + term
    h = h + bst_ref[...]

    # ---- stages ----
    for i in range(num_stage):
        if i > 0:
            # downsample: BN (folded) + Conv1d(k=r, stride=r) as r selection+GEMM taps
            Dsel_ref = next(it)   # (r, R_i, R_{i-1}) f32
            Wd_ref = next(it)     # (r, C_{i-1}, C_i) bf16
            bd_ref = next(it)     # (1, C_i)          f32
            acc = None
            for j in range(r):
                rows_j = jnp.dot(Dsel_ref[j], h, preferred_element_type=F32)
                term = jnp.dot(rows_j.astype(BF16), Wd_ref[j],
                               preferred_element_type=F32)
                acc = term if acc is None else acc + term
            h = acc + bd_ref[...]

        T_ref = next(it)          # (KL, R_i, R_i) f32: per-batch zero-padded time shifts
        for _ in range(num_blocks[i]):
            wdw_ref = next(it)    # (KL, 1, C) f32  depthwise taps (large+small+BNs+norm)
            bdw_ref = next(it)    # (1, C)     f32
            w11_ref = next(it); b11_ref = next(it)   # ConvFFN1  C -> H (bf16 / f32 bias)
            w12_ref = next(it); b12_ref = next(it)   #           H -> C
            w21_ref = next(it); b21_ref = next(it)   # ConvFFN2  C -> H (permute folded)
            w22_ref = next(it); b22_ref = next(it)   #           H -> C

            # depthwise large-kernel conv (+ reparam small kernel, BN_L, BN_S, norm), f32
            y = None
            for k in range(large[i]):
                tap = jnp.dot(T_ref[k], h, preferred_element_type=F32)       # (R, C)
                tap = tap * wdw_ref[k]                                       # (1, C) bcast
                y = tap if y is None else y + tap
            y = y + bdw_ref[...]

            # ConvFFN1 (groups = nvars), dense block-diagonal GEMMs on the MXU (bf16)
            a1 = jnp.dot(y.astype(BF16), w11_ref[...],
                         preferred_element_type=F32) + b11_ref[...]
            a1 = _gelu_exact(a1)
            z = jnp.dot(a1.astype(BF16), w12_ref[...],
                        preferred_element_type=F32) + b12_ref[...]

            # ConvFFN2 (groups = dmodel); the (m,d)->(d,m) permute is folded into w21/w22
            a2 = jnp.dot(z.astype(BF16), w21_ref[...],
                         preferred_element_type=F32) + b21_ref[...]
            a2 = _gelu_exact(a2)
            y2 = jnp.dot(a2.astype(BF16), w22_ref[...],
                         preferred_element_type=F32) + b22_ref[...]

            h = h + y2            # residual around the whole block (f32)

    out_ref[...] = h


# ----------------------------- structural constant matrices -----------------------------
# Built from static shapes on the host (numpy); become jit constants.

def _patch_select(B, M, P):
    """S[m] maps rows ordered (b, m', p) -> rows (b, p), selecting variable m."""
    S = np.zeros((M, B * P, B * M * P), np.float32)
    for m in range(M):
        for b in range(B):
            for p in range(P):
                S[m, b * P + p, (b * M + m) * P + p] = 1.0
    return jnp.asarray(S)


def _shift_mats(B, N, KL):
    """T[k] @ h == h shifted by (k - pad) time steps, zero outside each batch element."""
    pad = KL // 2
    T = np.zeros((KL, B * N, B * N), np.float32)
    for k in range(KL):
        off = k - pad
        for b in range(B):
            for n in range(N):
                ns = n + off
                if 0 <= ns < N:
                    T[k, b * N + n, b * N + ns] = 1.0
    return jnp.asarray(T)


def _down_select(B, Nin, r):
    """Dsel[j] selects rows (b, n2*r + j) -> rows (b, n2) for the stride-r downsample."""
    Nout = Nin // r
    Dm = np.zeros((r, B * Nout, B * Nin), np.float32)
    for j in range(r):
        for b in range(B):
            for n in range(Nout):
                Dm[j, b * Nout + n, b * Nin + n * r + j] = 1.0
    return jnp.asarray(Dm)


# ----------------------------- parameter init / weight folding -----------------------------

def _bn_fold(gamma, beta, mean, var):
    scale = gamma / jnp.sqrt(var + EPS)
    shift = beta - mean * scale
    return scale, shift


def init_bn(key, C):
    k1, k2, k3, k4 = jax.random.split(key, 4)
    gamma = 1.0 + 0.1 * jax.random.normal(k1, (C,), F32)
    beta = 0.1 * jax.random.normal(k2, (C,), F32)
    mean = 0.1 * jax.random.normal(k3, (C,), F32)
    var = 0.5 + jax.random.uniform(k4, (C,), F32)
    return _bn_fold(gamma, beta, mean, var)


def init_stem(key, ps, D0, M):
    """Stem Conv1d(1, D0, k=ps, stride=ps) + BN(D0), folded; per-variable copy placed in
    its own column slab so one GEMM per variable yields the (m, d)-ordered layout."""
    k1, k2, k3 = jax.random.split(key, 3)
    w = (1.0 / math.sqrt(ps)) * jax.random.normal(k1, (ps, D0), F32)
    bias = 0.1 * jax.random.normal(k2, (D0,), F32)
    s, t = init_bn(k3, D0)
    wf = w * s[None, :]
    bf = bias * s + t
    Wm = jnp.zeros((M, ps, M * D0), F32)
    for m in range(M):
        Wm = Wm.at[m, :, m * D0:(m + 1) * D0].set(wf)
    return dict(w=Wm.astype(BF16), b=jnp.tile(bf, M)[None, :])


def init_downsample(key, Ci, Co, r, M):
    """BatchNorm1d(Ci) then Conv1d(Ci, Co, k=r, stride=r): BN folded into the conv, one
    dense block-diagonal (over variables) matrix per stride tap."""
    k1, k2, k3 = jax.random.split(key, 3)
    W = (1.0 / math.sqrt(Ci * r)) * jax.random.normal(k1, (Co, Ci, r), F32)
    bias = 0.1 * jax.random.normal(k2, (Co,), F32)
    s, t = init_bn(k3, Ci)                          # BN BEFORE conv
    W_eff = W * s[None, :, None]                    # (Co, Ci, r)
    b_eff = bias + jnp.einsum('oik,i->o', W, t)     # (Co,)
    taps = []
    for j in range(r):
        mat = W_eff[:, :, j].T                      # (Ci, Co)
        taps.append(jsl.block_diag(*([mat] * M)))   # (M*Ci, M*Co)
    return dict(w=jnp.stack(taps, 0).astype(BF16),  # (r, M*Ci, M*Co)
                b=jnp.tile(b_eff, M)[None, :])      # (1, M*Co)


def init_block(key, M, D, KL, KS, ffn_ratio):
    """Block = ReparamLargeKernelConv(+BNs) + BatchNorm1d(D) + ConvFFN1 + ConvFFN2,
    folded into depthwise taps + 4 dense (block-diagonal) bf16 matrices."""
    dff = D * ffn_ratio
    C = M * D
    H = M * dff
    keys = jax.random.split(key, 12)

    # depthwise large / small kernels (PyTorch weight (C,1,K) stored here as (K,C))
    wL = 0.2 * jax.random.normal(keys[0], (KL, C), F32)
    sL, tL = init_bn(keys[1], C)
    wS = 0.2 * jax.random.normal(keys[2], (KS, C), F32)
    sS, tS = init_bn(keys[3], C)

    # self.norm = BatchNorm1d(D): per-d affine, broadcast over variables (c = m*D + d)
    ns_d, nb_d = init_bn(keys[4], D)
    ns = jnp.tile(ns_d, M)
    nb = jnp.tile(nb_d, M)

    off = (KL - KS) // 2
    wS_pad = jnp.zeros((KL, C), F32).at[off:off + KS, :].set(wS)
    wdw = (wL * (sL * ns)[None, :] + wS_pad * (sS * ns)[None, :]).reshape(KL, 1, C)
    bdw = (ns * (tL + tS) + nb)[None, :]

    # ConvFFN1: groups = nvars (per variable m), D -> dff -> D  => block-diagonal dense
    w1_1 = (1.0 / math.sqrt(D)) * jax.random.normal(keys[5], (M, D, dff), F32)
    b1_1 = 0.1 * jax.random.normal(keys[6], (M, dff), F32)
    w1_2 = (1.0 / math.sqrt(dff)) * jax.random.normal(keys[7], (M, dff, D), F32)
    b1_2 = 0.1 * jax.random.normal(keys[8], (M, D), F32)
    w11 = jsl.block_diag(*[w1_1[m] for m in range(M)])          # (C, H)
    b11 = b1_1.reshape(1, H)
    w12 = jsl.block_diag(*[w1_2[m] for m in range(M)])          # (H, C)
    b12 = b1_2.reshape(1, C)

    # ConvFFN2: groups = dmodel (per feature d), M -> M*ffn_ratio -> M, in channel order
    # c' = d*M + m.  Fold that permutation into the dense weights (no transpose at runtime).
    H2 = M * ffn_ratio
    w2_1 = (1.0 / math.sqrt(M)) * jax.random.normal(keys[9], (D, M, H2), F32)
    b2_1 = 0.1 * jax.random.normal(keys[10], (D, H2), F32)
    ka, kb = jax.random.split(keys[11])
    w2_2 = (1.0 / math.sqrt(H2)) * jax.random.normal(ka, (D, H2, M), F32)
    b2_2 = 0.1 * jax.random.normal(kb, (D, M), F32)

    pidx = np.arange(C).reshape(D, M).T.reshape(-1)              # pidx[m*D+d] = d*M+m
    w21 = jsl.block_diag(*[w2_1[d] for d in range(D)])[pidx, :]  # (C, H)
    b21 = b2_1.reshape(1, H)
    w22 = jsl.block_diag(*[w2_2[d] for d in range(D)])[:, pidx]  # (H, C)
    b22 = b2_2.reshape(-1)[pidx].reshape(1, C)

    return dict(wdw=wdw, bdw=bdw,
                w11=w11.astype(BF16), b11=b11, w12=w12.astype(BF16), b12=b12,
                w21=w21.astype(BF16), b21=b21, w22=w22.astype(BF16), b22=b22)


# ----------------------------- forward pass -----------------------------

def moderntcn_forward(x, params, cfg):
    """ModernTCN.forward for task_name='classification' (eval mode; dropout = identity).
    Returns the PyTorch-shaped output (B, M, dims[-1], N_final)."""
    B, M, L = x.shape
    ps, st = cfg['patch_size'], cfg['patch_stride']
    r = cfg['downsample_ratio']
    dims = cfg['dims']
    num_blocks = cfg['num_blocks']
    large = cfg['large_size']
    num_stage = len(num_blocks)

    # TODO(synk): the ps != st replicate-pad stem branch and the N % r != 0 downsample
    # replicate-pad branch of the reference are not exercised by this config and are not
    # implemented (asserted out instead of faked).
    assert ps == st and L % ps == 0
    P = L // ps

    Ns = [P]
    for _ in range(1, num_stage):
        assert Ns[-1] % r == 0
        Ns.append(Ns[-1] // r)
    Rs = [B * n for n in Ns]
    Cs = [M * d for d in dims]

    # structural constant matrices (fold patch permute / time shifts / stride selection)
    S_sel = _patch_select(B, M, P)
    Ts = [_shift_mats(B, Ns[i], large[i]) for i in range(num_stage)]
    Dsels = [_down_select(B, Ns[i - 1], r) for i in range(1, num_stage)]

    x_rows = x.reshape(B * M * P, ps)              # pure reshape: rows ordered (b, m, p)

    args = [x_rows, S_sel, params['stem']['w'], params['stem']['b']]
    for i in range(num_stage):
        if i > 0:
            ds = params['down'][i - 1]
            args += [Dsels[i - 1], ds['w'], ds['b']]
        args.append(Ts[i])
        for bp in params['stages'][i]:
            args += [bp['wdw'], bp['bdw'], bp['w11'], bp['b11'], bp['w12'], bp['b12'],
                     bp['w21'], bp['b21'], bp['w22'], bp['b22']]

    # rough cost estimate (advisory only)
    flops = M * (2 * Rs[0] * (B * M * P) * ps + 2 * Rs[0] * ps * Cs[0])
    trans = 0
    for i in range(num_stage):
        R, C, H = Rs[i], Cs[i], Cs[i] * cfg['ffn_ratio']
        if i > 0:
            flops += r * (2 * R * Rs[i - 1] * Cs[i - 1] + 2 * R * Cs[i - 1] * C)
        for _ in params['stages'][i]:
            flops += large[i] * 2 * R * R * C
            flops += 2 * (2 * R * C * H + 2 * R * H * C)
            trans += 2 * R * H
    nbytes = sum(int(np.prod(a.shape)) * a.dtype.itemsize for a in args) \
        + Rs[-1] * Cs[-1] * 4

    kernel = partial(_fused_kernel, (M, r, tuple(num_blocks), tuple(large)))
    out2d = pl.pallas_call(
        kernel,
        out_shape=jax.ShapeDtypeStruct((Rs[-1], Cs[-1]), F32),
        cost_estimate=pl.CostEstimate(flops=int(flops), transcendentals=int(trans),
                                      bytes_accessed=int(nbytes)),
    )(*args)

    # classification(): class_dropout is identity in eval / drop=0.0; no head is applied.
    # Single tiny XLA transpose back to the PyTorch layout (B, M, D, N); folding it into
    # the kernel would need a lane<->sublane relayout that does not pay at this size.
    D_last = dims[-1]
    return out2d.reshape(B, Ns[-1], M, D_last).transpose(0, 2, 3, 1)


# ----------------------------- main -----------------------------

if __name__ == "__main__":
    cfg = dict(patch_size=4, patch_stride=4, downsample_ratio=2,
               dims=[16, 32], num_blocks=[1, 1], large_size=[5, 5], small_size=[3, 3],
               ffn_ratio=2, nvars=4, seq_len=32)

    key = jax.random.PRNGKey(0)
    kx, kp = jax.random.split(key)
    B, M, L = 2, cfg['nvars'], cfg['seq_len']
    x = jax.random.normal(kx, (B, M, L), F32)

    num_stage = len(cfg['num_blocks'])
    keys = jax.random.split(kp, 2 + sum(cfg['num_blocks']))
    params = {
        'stem': init_stem(keys[0], cfg['patch_size'], cfg['dims'][0], M),
        'down': [init_downsample(keys[1], cfg['dims'][i], cfg['dims'][i + 1],
                                 cfg['downsample_ratio'], M)
                 for i in range(num_stage - 1)],
        'stages': [],
    }
    ki = 2
    for i in range(num_stage):
        blks = []
        for _ in range(cfg['num_blocks'][i]):
            blks.append(init_block(keys[ki], M, cfg['dims'][i],
                                   cfg['large_size'][i], cfg['small_size'][i],
                                   cfg['ffn_ratio']))
            ki += 1
        params['stages'].append(blks)

    fwd = jax.jit(partial(moderntcn_forward, cfg=cfg))
    out = jax.block_until_ready(fwd(x, params))

    expected_N = (L // cfg['patch_stride']) // (cfg['downsample_ratio'] ** (num_stage - 1))
    assert out.shape == (B, M, cfg['dims'][-1], expected_N), out.shape
    assert bool(jnp.all(jnp.isfinite(out)))
    # TODO(synk): RevIN and Flatten_Head / head_class exist in __init__ but are never
    # invoked by forward() for task_name='classification', so they are not implemented.
    print("KERNEL_OK")
</pallas_src>

<mosaic_0001>
module attributes {stable_mosaic.version = 11 : i64} {
  func.func @_fused_kernel(%arg0: memref<64x4xf32, #tpu.memory_space<vmem>>, %arg1: memref<4x16x64xf32, #tpu.memory_space<vmem>>, %arg2: memref<4x4x64xbf16, #tpu.memory_space<vmem>>, %arg3: memref<1x64xf32, #tpu.memory_space<vmem>>, %arg4: memref<5x16x16xf32, #tpu.memory_space<vmem>>, %arg5: memref<5x1x64xf32, #tpu.memory_space<vmem>>, %arg6: memref<1x64xf32, #tpu.memory_space<vmem>>, %arg7: memref<64x128xbf16, #tpu.memory_space<vmem>>, %arg8: memref<1x128xf32, #tpu.memory_space<vmem>>, %arg9: memref<128x64xbf16, #tpu.memory_space<vmem>>, %arg10: memref<1x64xf32, #tpu.memory_space<vmem>>, %arg11: memref<64x128xbf16, #tpu.memory_space<vmem>>, %arg12: memref<1x128xf32, #tpu.memory_space<vmem>>, %arg13: memref<128x64xbf16, #tpu.memory_space<vmem>>, %arg14: memref<1x64xf32, #tpu.memory_space<vmem>>, %arg15: memref<2x8x16xf32, #tpu.memory_space<vmem>>, %arg16: memref<2x64x128xbf16, #tpu.memory_space<vmem>>, %arg17: memref<1x128xf32, #tpu.memory_space<vmem>>, %arg18: memref<5x8x8xf32, #tpu.memory_space<vmem>>, %arg19: memref<5x1x128xf32, #tpu.memory_space<vmem>>, %arg20: memref<1x128xf32, #tpu.memory_space<vmem>>, %arg21: memref<128x256xbf16, #tpu.memory_space<vmem>>, %arg22: memref<1x256xf32, #tpu.memory_space<vmem>>, %arg23: memref<256x128xbf16, #tpu.memory_space<vmem>>, %arg24: memref<1x128xf32, #tpu.memory_space<vmem>>, %arg25: memref<128x256xbf16, #tpu.memory_space<vmem>>, %arg26: memref<1x256xf32, #tpu.memory_space<vmem>>, %arg27: memref<256x128xbf16, #tpu.memory_space<vmem>>, %arg28: memref<1x128xf32, #tpu.memory_space<vmem>>, %arg29: memref<8x128xf32, #tpu.memory_space<vmem>>) attributes {dimension_semantics = [], scalar_prefetch = 0 : i64, scratch_operands = 0 : i64, tpu.core_type = #tpu.core_type<tc>} {
    %c0 = arith.constant 0 : index
    %c0_0 = arith.constant 0 : index
    %0 = vector.load %arg0[%c0, %c0_0] : memref<64x4xf32, #tpu.memory_space<vmem>>, vector<64x4xf32>
    %c0_1 = arith.constant 0 : index
    %c0_2 = arith.constant 0 : index
    %c0_3 = arith.constant 0 : index
    %1 = vector.load %arg1[%c0_1, %c0_2, %c0_3] : memref<4x16x64xf32, #tpu.memory_space<vmem>>, vector<1x16x64xf32>
    %2 = vector.shape_cast %1 : vector<1x16x64xf32> to vector<16x64xf32>
    %cst = arith.constant dense<0.000000e+00> : vector<16x4xf32>
    %3 = tpu.matmul %2, %0, %cst {dimension_numbers = #tpu.dot_dimension_numbers<[1], [0], [0], [1], [0, 0, 1, 1], [], []>} : vector<16x64xf32>, vector<64x4xf32>, vector<16x4xf32> -> vector<16x4xf32>
    %4 = arith.truncf %3 : vector<16x4xf32> to vector<16x4xbf16>
    %c0_4 = arith.constant 0 : index
    %c0_5 = arith.constant 0 : index
    %c0_6 = arith.constant 0 : index
    %5 = vector.load %arg2[%c0_4, %c0_5, %c0_6] : memref<4x4x64xbf16, #tpu.memory_space<vmem>>, vector<1x4x64xbf16>
    %6 = vector.shape_cast %5 : vector<1x4x64xbf16> to vector<4x64xbf16>
    %cst_7 = arith.constant dense<0.000000e+00> : vector<16x64xf32>
    %7 = tpu.matmul %4, %6, %cst_7 {dimension_numbers = #tpu.dot_dimension_numbers<[1], [0], [0], [1], [0, 0, 1, 1], [], []>} : vector<16x4xbf16>, vector<4x64xbf16>, vector<16x64xf32> -> vector<16x64xf32>
    %c1 = arith.constant 1 : index
    %c0_8 = arith.constant 0 : index
    %c0_9 = arith.constant 0 : index
    %8 = vector.load %arg1[%c1, %c0_8, %c0_9] : memref<4x16x64xf32, #tpu.memory_space<vmem>>, vector<1x16x64xf32>
    %9 = vector.shape_cast %8 : vector<1x16x64xf32> to vector<16x64xf32>
    %cst_10 = arith.constant dense<0.000000e+00> : vector<16x4xf32>
    %10 = tpu.matmul %9, %0, %cst_10 {dimension_numbers = #tpu.dot_dimension_numbers<[1], [0], [0], [1], [0, 0, 1, 1], [], []>} : vector<16x64xf32>, vector<64x4xf32>, vector<16x4xf32> -> vector<16x4xf32>
    %11 = arith.truncf %10 : vector<16x4xf32> to vector<16x4xbf16>
    %c1_11 = arith.constant 1 : index
    %c0_12 = arith.constant 0 : index
    %c0_13 = arith.constant 0 : index
    %12 = vector.load %arg2[%c1_11, %c0_12, %c0_13] : memref<4x4x64xbf16, #tpu.memory_space<vmem>>, vector<1x4x64xbf16>
    %13 = vector.shape_cast %12 : vector<1x4x64xbf16> to vector<4x64xbf16>
    %cst_14 = arith.constant dense<0.000000e+00> : vector<16x64xf32>
    %14 = tpu.matmul %11, %13, %cst_14 {dimension_numbers = #tpu.dot_dimension_numbers<[1], [0], [0], [1], [0, 0, 1, 1], [], []>} : vector<16x4xbf16>, vector<4x64xbf16>, vector<16x64xf32> -> vector<16x64xf32>
    %15 = arith.addf %7, %14 : vector<16x64xf32>
    %c2 = arith.constant 2 : index
    %c0_15 = arith.constant 0 : index
    %c0_16 = arith.constant 0 : index
    %16 = vector.load %arg1[%c2, %c0_15, %c0_16] : memref<4x16x64xf32, #tpu.memory_space<vmem>>, vector<1x16x64xf32>
    %17 = vector.shape_cast %16 : vector<1x16x64xf32> to vector<16x64xf32>
    %cst_17 = arith.constant dense<0.000000e+00> : vector<16x4xf32>
    %18 = tpu.matmul %17, %0, %cst_17 {dimension_numbers = #tpu.dot_dimension_numbers<[1], [0], [0], [1], [0, 0, 1, 1], [], []>} : vector<16x64xf32>, vector<64x4xf32>, vector<16x4xf32> -> vector<16x4xf32>
    %19 = arith.truncf %18 : vector<16x4xf32> to vector<16x4xbf16>
    %c2_18 = arith.constant 2 : index
    %c0_19 = arith.constant 0 : index
    %c0_20 = arith.constant 0 : index
    %20 = vector.load %arg2[%c2_18, %c0_19, %c0_20] : memref<4x4x64xbf16, #tpu.memory_space<vmem>>, vector<1x4x64xbf16>
    %21 = vector.shape_cast %20 : vector<1x4x64xbf16> to vector<4x64xbf16>
    %cst_21 = arith.constant dense<0.000000e+00> : vector<16x64xf32>
    %22 = tpu.matmul %19, %21, %cst_21 {dimension_numbers = #tpu.dot_dimension_numbers<[1], [0], [0], [1], [0, 0, 1, 1], [], []>} : vector<16x4xbf16>, vector<4x64xbf16>, vector<16x64xf32> -> vector<16x64xf32>
    %23 = arith.addf %15, %22 : vector<16x64xf32>
    %c3 = arith.constant 3 : index
    %c0_22 = arith.constant 0 : index
    %c0_23 = arith.constant 0 : index
    %24 = vector.load %arg1[%c3, %c0_22, %c0_23] : memref<4x16x64xf32, #tpu.memory_space<vmem>>, vector<1x16x64xf32>
    %25 = vector.shape_cast %24 : vector<1x16x64xf32> to vector<16x64xf32>
    %cst_24 = arith.constant dense<0.000000e+00> : vector<16x4xf32>
    %26 = tpu.matmul %25, %0, %cst_24 {dimension_numbers = #tpu.dot_dimension_numbers<[1], [0], [0], [1], [0, 0, 1, 1], [], []>} : vector<16x64xf32>, vector<64x4xf32>, vector<16x4xf32> -> vector<16x4xf32>
    %27 = arith.truncf %26 : vector<16x4xf32> to vector<16x4xbf16>
    %c3_25 = arith.constant 3 : index
    %c0_26 = arith.constant 0 : index
    %c0_27 = arith.constant 0 : index
    %28 = vector.load %arg2[%c3_25, %c0_26, %c0_27] : memref<4x4x64xbf16, #tpu.memory_space<vmem>>, vector<1x4x64xbf16>
    %29 = vector.shape_cast %28 : vector<1x4x64xbf16> to vector<4x64xbf16>
    %cst_28 = arith.constant dense<0.000000e+00> : vector<16x64xf32>
    %30 = tpu.matmul %27, %29, %cst_28 {dimension_numbers = #tpu.dot_dimension_numbers<[1], [0], [0], [1], [0, 0, 1, 1], [], []>} : vector<16x4xbf16>, vector<4x64xbf16>, vector<16x64xf32> -> vector<16x64xf32>
    %31 = arith.addf %23, %30 : vector<16x64xf32>
    %c0_29 = arith.constant 0 : index
    %c0_30 = arith.constant 0 : index
    %32 = vector.load %arg3[%c0_29, %c0_30] : memref<1x64xf32, #tpu.memory_space<vmem>>, vector<1x64xf32>
    %33 = vector.broadcast %32 : vector<1x64xf32> to vector<16x64xf32>
    %34 = arith.addf %31, %33 : vector<16x64xf32>
    %c0_31 = arith.constant 0 : index
    %c0_32 = arith.constant 0 : index
    %c0_33 = arith.constant 0 : index
    %35 = vector.load %arg4[%c0_31, %c0_32, %c0_33] : memref<5x16x16xf32, #tpu.memory_space<vmem>>, vector<1x16x16xf32>
    %36 = vector.shape_cast %35 : vector<1x16x16xf32> to vector<16x16xf32>
    %cst_34 = arith.constant dense<0.000000e+00> : vector<16x64xf32>
    %37 = tpu.matmul %36, %34, %cst_34 {dimension_numbers = #tpu.dot_dimension_numbers<[1], [0], [0], [1], [0, 0, 1, 1], [], []>} : vector<16x16xf32>, vector<16x64xf32>, vector<16x64xf32> -> vector<16x64xf32>
    %c0_35 = arith.constant 0 : index
    %c0_36 = arith.constant 0 : index
    %c0_37 = arith.constant 0 : index
    %38 = vector.load %arg5[%c0_35, %c0_36, %c0_37] : memref<5x1x64xf32, #tpu.memory_space<vmem>>, vector<1x1x64xf32>
    %39 = vector.shape_cast %38 : vector<1x1x64xf32> to vector<1x64xf32>
    %40 = vector.broadcast %39 : vector<1x64xf32> to vector<16x64xf32>
    %41 = arith.mulf %37, %40 : vector<16x64xf32>
    %c1_38 = arith.constant 1 : index
    %c0_39 = arith.constant 0 : index
    %c0_40 = arith.constant 0 : index
    %42 = vector.load %arg4[%c1_38, %c0_39, %c0_40] : memref<5x16x16xf32, #tpu.memory_space<vmem>>, vector<1x16x16xf32>
    %43 = vector.shape_cast %42 : vector<1x16x16xf32> to vector<16x16xf32>
    %cst_41 = arith.constant dense<0.000000e+00> : vector<16x64xf32>
    %44 = tpu.matmul %43, %34, %cst_41 {dimension_numbers = #tpu.dot_dimension_numbers<[1], [0], [0], [1], [0, 0, 1, 1], [], []>} : vector<16x16xf32>, vector<16x64xf32>, vector<16x64xf32> -> vector<16x64xf32>
    %c1_42 = arith.constant 1 : index
    %c0_43 = arith.constant 0 : index
    %c0_44 = arith.constant 0 : index
    %45 = vector.load %arg5[%c1_42, %c0_43, %c0_44] : memref<5x1x64xf32, #tpu.memory_space<vmem>>, vector<1x1x64xf32>
    %46 = vector.shape_cast %45 : vector<1x1x64xf32> to vector<1x64xf32>
    %47 = vector.broadcast %46 : vector<1x64xf32> to vector<16x64xf32>
    %48 = arith.mulf %44, %47 : vector<16x64xf32>
    %49 = arith.addf %41, %48 : vector<16x64xf32>
    %c2_45 = arith.constant 2 : index
    %c0_46 = arith.constant 0 : index
    %c0_47 = arith.constant 0 : index
    %50 = vector.load %arg4[%c2_45, %c0_46, %c0_47] : memref<5x16x16xf32, #tpu.memory_space<vmem>>, vector<1x16x16xf32>
    %51 = vector.shape_cast %50 : vector<1x16x16xf32> to vector<16x16xf32>
    %cst_48 = arith.constant dense<0.000000e+00> : vector<16x64xf32>
    %52 = tpu.matmul %51, %34, %cst_48 {dimension_numbers = #tpu.dot_dimension_numbers<[1], [0], [0], [1], [0, 0, 1, 1], [], []>} : vector<16x16xf32>, vector<16x64xf32>, vector<16x64xf32> -> vector<16x64xf32>
    %c2_49 = arith.constant 2 : index
    %c0_50 = arith.constant 0 : index
    %c0_51 = arith.constant 0 : index
    %53 = vector.load %arg5[%c2_49, %c0_50, %c0_51] : memref<5x1x64xf32, #tpu.memory_space<vmem>>, vector<1x1x64xf32>
    %54 = vector.shape_cast %53 : vector<1x1x64xf32> to vector<1x64xf32>
    %55 = vector.broadcast %54 : vector<1x64xf32> to vector<16x64xf32>
    %56 = arith.mulf %52, %55 : vector<16x64xf32>
    %57 = arith.addf %49, %56 : vector<16x64xf32>
    %c3_52 = arith.constant 3 : index
    %c0_53 = arith.constant 0 : index
    %c0_54 = arith.constant 0 : index
    %58 = vector.load %arg4[%c3_52, %c0_53, %c0_54] : memref<5x16x16xf32, #tpu.memory_space<vmem>>, vector<1x16x16xf32>
    %59 = vector.shape_cast %58 : vector<1x16x16xf32> to vector<16x16xf32>
    %cst_55 = arith.constant dense<0.000000e+00> : vector<16x64xf32>
    %60 = tpu.matmul %59, %34, %cst_55 {dimension_numbers = #tpu.dot_dimension_numbers<[1], [0], [0], [1], [0, 0, 1, 1], [], []>} : vector<16x16xf32>, vector<16x64xf32>, vector<16x64xf32> -> vector<16x64xf32>
    %c3_56 = arith.constant 3 : index
    %c0_57 = arith.constant 0 : index
    %c0_58 = arith.constant 0 : index
    %61 = vector.load %arg5[%c3_56, %c0_57, %c0_58] : memref<5x1x64xf32, #tpu.memory_space<vmem>>, vector<1x1x64xf32>
    %62 = vector.shape_cast %61 : vector<1x1x64xf32> to vector<1x64xf32>
    %63 = vector.broadcast %62 : vector<1x64xf32> to vector<16x64xf32>
    %64 = arith.mulf %60, %63 : vector<16x64xf32>
    %65 = arith.addf %57, %64 : vector<16x64xf32>
    %c4 = arith.constant 4 : index
    %c0_59 = arith.constant 0 : index
    %c0_60 = arith.constant 0 : index
    %66 = vector.load %arg4[%c4, %c0_59, %c0_60] : memref<5x16x16xf32, #tpu.memory_space<vmem>>, vector<1x16x16xf32>
    %67 = vector.shape_cast %66 : vector<1x16x16xf32> to vector<16x16xf32>
    %cst_61 = arith.constant dense<0.000000e+00> : vector<16x64xf32>
    %68 = tpu.matmul %67, %34, %cst_61 {dimension_numbers = #tpu.dot_dimension_numbers<[1], [0], [0], [1], [0, 0, 1, 1], [], []>} : vector<16x16xf32>, vector<16x64xf32>, vector<16x64xf32> -> vector<16x64xf32>
    %c4_62 = arith.constant 4 : index
    %c0_63 = arith.constant 0 : index
    %c0_64 = arith.constant 0 : index
    %69 = vector.load %arg5[%c4_62, %c0_63, %c0_64] : memref<5x1x64xf32, #tpu.memory_space<vmem>>, vector<1x1x64xf32>
    %70 = vector.shape_cast %69 : vector<1x1x64xf32> to vector<1x64xf32>
    %71 = vector.broadcast %70 : vector<1x64xf32> to vector<16x64xf32>
    %72 = arith.mulf %68, %71 : vector<16x64xf32>
    %73 = arith.addf %65, %72 : vector<16x64xf32>
    %c0_65 = arith.constant 0 : index
    %c0_66 = arith.constant 0 : index
    %74 = vector.load %arg6[%c0_65, %c0_66] : memref<1x64xf32, #tpu.memory_space<vmem>>, vector<1x64xf32>
    %75 = vector.broadcast %74 : vector<1x64xf32> to vector<16x64xf32>
    %76 = arith.addf %73, %75 : vector<16x64xf32>
    %77 = arith.truncf %76 : vector<16x64xf32> to vector<16x64xbf16>
    %c0_67 = arith.constant 0 : index
    %c0_68 = arith.constant 0 : index
    %78 = vector.load %arg7[%c0_67, %c0_68] : memref<64x128xbf16, #tpu.memory_space<vmem>>, vector<64x128xbf16>
    %cst_69 = arith.constant dense<0.000000e+00> : vector<16x128xf32>
    %79 = tpu.matmul %77, %78, %cst_69 {dimension_numbers = #tpu.dot_dimension_numbers<[1], [0], [0], [1], [0, 0, 1, 1], [], []>} : vector<16x64xbf16>, vector<64x128xbf16>, vector<16x128xf32> -> vector<16x128xf32>
    %c0_70 = arith.constant 0 : index
    %c0_71 = arith.constant 0 : index
    %80 = vector.load %arg8[%c0_70, %c0_71] : memref<1x128xf32, #tpu.memory_space<vmem>>, vector<1x128xf32>
    %81 = vector.broadcast %80 : vector<1x128xf32> to vector<16x128xf32>
    %82 = arith.addf %79, %81 : vector<16x128xf32>
    %cst_72 = arith.constant 5.000000e-01 : f32
    %83 = vector.broadcast %cst_72 : f32 to vector<16x128xf32>
    %84 = arith.mulf %83, %82 : vector<16x128xf32>
    %cst_73 = arith.constant 0.707106769 : f32
    %85 = vector.broadcast %cst_73 : f32 to vector<16x128xf32>
    %86 = arith.mulf %82, %85 : vector<16x128xf32>
    %87 = math.erf %86 : vector<16x128xf32>
    %cst_74 = arith.constant 1.000000e+00 : f32
    %88 = vector.broadcast %cst_74 : f32 to vector<16x128xf32>
    %89 = arith.addf %88, %87 : vector<16x128xf32>
    %90 = arith.mulf %84, %89 : vector<16x128xf32>
    %91 = arith.truncf %90 : vector<16x128xf32> to vector<16x128xbf16>
    %c0_75 = arith.constant 0 : index
    %c0_76 = arith.constant 0 : index
    %92 = vector.load %arg9[%c0_75, %c0_76] : memref<128x64xbf16, #tpu.memory_space<vmem>>, vector<128x64xbf16>
    %cst_77 = arith.constant dense<0.000000e+00> : vector<16x64xf32>
    %93 = tpu.matmul %91, %92, %cst_77 {dimension_numbers = #tpu.dot_dimension_numbers<[1], [0], [0], [1], [0, 0, 1, 1], [], []>} : vector<16x128xbf16>, vector<128x64xbf16>, vector<16x64xf32> -> vector<16x64xf32>
    %c0_78 = arith.constant 0 : index
    %c0_79 = arith.constant 0 : index
    %94 = vector.load %arg10[%c0_78, %c0_79] : memref<1x64xf32, #tpu.memory_space<vmem>>, vector<1x64xf32>
    %95 = vector.broadcast %94 : vector<1x64xf32> to vector<16x64xf32>
    %96 = arith.addf %93, %95 : vector<16x64xf32>
    %97 = arith.truncf %96 : vector<16x64xf32> to vector<16x64xbf16>
    %c0_80 = arith.constant 0 : index
    %c0_81 = arith.constant 0 : index
    %98 = vector.load %arg11[%c0_80, %c0_81] : memref<64x128xbf16, #tpu.memory_space<vmem>>, vector<64x128xbf16>
    %cst_82 = arith.constant dense<0.000000e+00> : vector<16x128xf32>
    %99 = tpu.matmul %97, %98, %cst_82 {dimension_numbers = #tpu.dot_dimension_numbers<[1], [0], [0], [1], [0, 0, 1, 1], [], []>} : vector<16x64xbf16>, vector<64x128xbf16>, vector<16x128xf32> -> vector<16x128xf32>
    %c0_83 = arith.constant 0 : index
    %c0_84 = arith.constant 0 : index
    %100 = vector.load %arg12[%c0_83, %c0_84] : memref<1x128xf32, #tpu.memory_space<vmem>>, vector<1x128xf32>
    %101 = vector.broadcast %100 : vector<1x128xf32> to vector<16x128xf32>
    %102 = arith.addf %99, %101 : vector<16x128xf32>
    %cst_85 = arith.constant 5.000000e-01 : f32
    %103 = vector.broadcast %cst_85 : f32 to vector<16x128xf32>
    %104 = arith.mulf %103, %102 : vector<16x128xf32>
    %cst_86 = arith.constant 0.707106769 : f32
    %105 = vector.broadcast %cst_86 : f32 to vector<16x128xf32>
    %106 = arith.mulf %102, %105 : vector<16x128xf32>
    %107 = math.erf %106 : vector<16x128xf32>
    %cst_87 = arith.constant 1.000000e+00 : f32
    %108 = vector.broadcast %cst_87 : f32 to vector<16x128xf32>
    %109 = arith.addf %108, %107 : vector<16x128xf32>
    %110 = arith.mulf %104, %109 : vector<16x128xf32>
    %111 = arith.truncf %110 : vector<16x128xf32> to vector<16x128xbf16>
    %c0_88 = arith.constant 0 : index
    %c0_89 = arith.constant 0 : index
    %112 = vector.load %arg13[%c0_88, %c0_89] : memref<128x64xbf16, #tpu.memory_space<vmem>>, vector<128x64xbf16>
    %cst_90 = arith.constant dense<0.000000e+00> : vector<16x64xf32>
    %113 = tpu.matmul %111, %112, %cst_90 {dimension_numbers = #tpu.dot_dimension_numbers<[1], [0], [0], [1], [0, 0, 1, 1], [], []>} : vector<16x128xbf16>, vector<128x64xbf16>, vector<16x64xf32> -> vector<16x64xf32>
    %c0_91 = arith.constant 0 : index
    %c0_92 = arith.constant 0 : index
    %114 = vector.load %arg14[%c0_91, %c0_92] : memref<1x64xf32, #tpu.memory_space<vmem>>, vector<1x64xf32>
    %115 = vector.broadcast %114 : vector<1x64xf32> to vector<16x64xf32>
    %116 = arith.addf %113, %115 : vector<16x64xf32>
    %117 = arith.addf %34, %116 : vector<16x64xf32>
    %c0_93 = arith.constant 0 : index
    %c0_94 = arith.constant 0 : index
    %c0_95 = arith.constant 0 : index
    %118 = vector.load %arg15[%c0_93, %c0_94, %c0_95] : memref<2x8x16xf32, #tpu.memory_space<vmem>>, vector<1x8x16xf32>
    %119 = vector.shape_cast %118 : vector<1x8x16xf32> to vector<8x16xf32>
    %cst_96 = arith.constant dense<0.000000e+00> : vector<8x64xf32>
    %120 = tpu.matmul %119, %117, %cst_96 {dimension_numbers = #tpu.dot_dimension_numbers<[1], [0], [0], [1], [0, 0, 1, 1], [], []>} : vector<8x16xf32>, vector<16x64xf32>, vector<8x64xf32> -> vector<8x64xf32>
    %121 = arith.truncf %120 : vector<8x64xf32> to vector<8x64xbf16>
    %c0_97 = arith.constant 0 : index
    %c0_98 = arith.constant 0 : index
    %c0_99 = arith.constant 0 : index
    %122 = vector.load %arg16[%c0_97, %c0_98, %c0_99] : memref<2x64x128xbf16, #tpu.memory_space<vmem>>, vector<1x64x128xbf16>
    %123 = vector.shape_cast %122 : vector<1x64x128xbf16> to vector<64x128xbf16>
    %cst_100 = arith.constant dense<0.000000e+00> : vector<8x128xf32>
    %124 = tpu.matmul %121, %123, %cst_100 {dimension_numbers = #tpu.dot_dimension_numbers<[1], [0], [0], [1], [0, 0, 1, 1], [], []>} : vector<8x64xbf16>, vector<64x128xbf16>, vector<8x128xf32> -> vector<8x128xf32>
    %c1_101 = arith.constant 1 : index
    %c0_102 = arith.constant 0 : index
    %c0_103 = arith.constant 0 : index
    %125 = vector.load %arg15[%c1_101, %c0_102, %c0_103] : memref<2x8x16xf32, #tpu.memory_space<vmem>>, vector<1x8x16xf32>
    %126 = vector.shape_cast %125 : vector<1x8x16xf32> to vector<8x16xf32>
    %cst_104 = arith.constant dense<0.000000e+00> : vector<8x64xf32>
    %127 = tpu.matmul %126, %117, %cst_104 {dimension_numbers = #tpu.dot_dimension_numbers<[1], [0], [0], [1], [0, 0, 1, 1], [], []>} : vector<8x16xf32>, vector<16x64xf32>, vector<8x64xf32> -> vector<8x64xf32>
    %128 = arith.truncf %127 : vector<8x64xf32> to vector<8x64xbf16>
    %c1_105 = arith.constant 1 : index
    %c0_106 = arith.constant 0 : index
    %c0_107 = arith.constant 0 : index
    %129 = vector.load %arg16[%c1_105, %c0_106, %c0_107] : memref<2x64x128xbf16, #tpu.memory_space<vmem>>, vector<1x64x128xbf16>
    %130 = vector.shape_cast %129 : vector<1x64x128xbf16> to vector<64x128xbf16>
    %cst_108 = arith.constant dense<0.000000e+00> : vector<8x128xf32>
    %131 = tpu.matmul %128, %130, %cst_108 {dimension_numbers = #tpu.dot_dimension_numbers<[1], [0], [0], [1], [0, 0, 1, 1], [], []>} : vector<8x64xbf16>, vector<64x128xbf16>, vector<8x128xf32> -> vector<8x128xf32>
    %132 = arith.addf %124, %131 : vector<8x128xf32>
    %c0_109 = arith.constant 0 : index
    %c0_110 = arith.constant 0 : index
    %133 = vector.load %arg17[%c0_109, %c0_110] : memref<1x128xf32, #tpu.memory_space<vmem>>, vector<1x128xf32>
    %134 = vector.broadcast %133 : vector<1x128xf32> to vector<8x128xf32>
    %135 = arith.addf %132, %134 : vector<8x128xf32>
    %c0_111 = arith.constant 0 : index
    %c0_112 = arith.constant 0 : index
    %c0_113 = arith.constant 0 : index
    %136 = vector.load %arg18[%c0_111, %c0_112, %c0_113] : memref<5x8x8xf32, #tpu.memory_space<vmem>>, vector<1x8x8xf32>
    %137 = vector.shape_cast %136 : vector<1x8x8xf32> to vector<8x8xf32>
    %cst_114 = arith.constant dense<0.000000e+00> : vector<8x128xf32>
    %138 = tpu.matmul %137, %135, %cst_114 {dimension_numbers = #tpu.dot_dimension_numbers<[1], [0], [0], [1], [0, 0, 1, 1], [], []>} : vector<8x8xf32>, vector<8x128xf32>, vector<8x128xf32> -> vector<8x128xf32>
    %c0_115 = arith.constant 0 : index
    %c0_116 = arith.constant 0 : index
    %c0_117 = arith.constant 0 : index
    %139 = vector.load %arg19[%c0_115, %c0_116, %c0_117] : memref<5x1x128xf32, #tpu.memory_space<vmem>>, vector<1x1x128xf32>
    %140 = vector.shape_cast %139 : vector<1x1x128xf32> to vector<1x128xf32>
    %141 = vector.broadcast %140 : vector<1x128xf32> to vector<8x128xf32>
    %142 = arith.mulf %138, %141 : vector<8x128xf32>
    %c1_118 = arith.constant 1 : index
    %c0_119 = arith.constant 0 : index
    %c0_120 = arith.constant 0 : index
    %143 = vector.load %arg18[%c1_118, %c0_119, %c0_120] : memref<5x8x8xf32, #tpu.memory_space<vmem>>, vector<1x8x8xf32>
    %144 = vector.shape_cast %143 : vector<1x8x8xf32> to vector<8x8xf32>
    %cst_121 = arith.constant dense<0.000000e+00> : vector<8x128xf32>
    %145 = tpu.matmul %144, %135, %cst_121 {dimension_numbers = #tpu.dot_dimension_numbers<[1], [0], [0], [1], [0, 0, 1, 1], [], []>} : vector<8x8xf32>, vector<8x128xf32>, vector<8x128xf32> -> vector<8x128xf32>
    %c1_122 = arith.constant 1 : index
    %c0_123 = arith.constant 0 : index
    %c0_124 = arith.constant 0 : index
    %146 = vector.load %arg19[%c1_122, %c0_123, %c0_124] : memref<5x1x128xf32, #tpu.memory_space<vmem>>, vector<1x1x128xf32>
    %147 = vector.shape_cast %146 : vector<1x1x128xf32> to vector<1x128xf32>
    %148 = vector.broadcast %147 : vector<1x128xf32> to vector<8x128xf32>
    %149 = arith.mulf %145, %148 : vector<8x128xf32>
    %150 = arith.addf %142, %149 : vector<8x128xf32>
    %c2_125 = arith.constant 2 : index
    %c0_126 = arith.constant 0 : index
    %c0_127 = arith.constant 0 : index
    %151 = vector.load %arg18[%c2_125, %c0_126, %c0_127] : memref<5x8x8xf32, #tpu.memory_space<vmem>>, vector<1x8x8xf32>
    %152 = vector.shape_cast %151 : vector<1x8x8xf32> to vector<8x8xf32>
    %cst_128 = arith.constant dense<0.000000e+00> : vector<8x128xf32>
    %153 = tpu.matmul %152, %135, %cst_128 {dimension_numbers = #tpu.dot_dimension_numbers<[1], [0], [0], [1], [0, 0, 1, 1], [], []>} : vector<8x8xf32>, vector<8x128xf32>, vector<8x128xf32> -> vector<8x128xf32>
    %c2_129 = arith.constant 2 : index
    %c0_130 = arith.constant 0 : index
    %c0_131 = arith.constant 0 : index
    %154 = vector.load %arg19[%c2_129, %c0_130, %c0_131] : memref<5x1x128xf32, #tpu.memory_space<vmem>>, vector<1x1x128xf32>
    %155 = vector.shape_cast %154 : vector<1x1x128xf32> to vector<1x128xf32>
    %156 = vector.broadcast %155 : vector<1x128xf32> to vector<8x128xf32>
    %157 = arith.mulf %153, %156 : vector<8x128xf32>
    %158 = arith.addf %150, %157 : vector<8x128xf32>
    %c3_132 = arith.constant 3 : index
    %c0_133 = arith.constant 0 : index
    %c0_134 = arith.constant 0 : index
    %159 = vector.load %arg18[%c3_132, %c0_133, %c0_134] : memref<5x8x8xf32, #tpu.memory_space<vmem>>, vector<1x8x8xf32>
    %160 = vector.shape_cast %159 : vector<1x8x8xf32> to vector<8x8xf32>
    %cst_135 = arith.constant dense<0.000000e+00> : vector<8x128xf32>
    %161 = tpu.matmul %160, %135, %cst_135 {dimension_numbers = #tpu.dot_dimension_numbers<[1], [0], [0], [1], [0, 0, 1, 1], [], []>} : vector<8x8xf32>, vector<8x128xf32>, vector<8x128xf32> -> vector<8x128xf32>
    %c3_136 = arith.constant 3 : index
    %c0_137 = arith.constant 0 : index
    %c0_138 = arith.constant 0 : index
    %162 = vector.load %arg19[%c3_136, %c0_137, %c0_138] : memref<5x1x128xf32, #tpu.memory_space<vmem>>, vector<1x1x128xf32>
    %163 = vector.shape_cast %162 : vector<1x1x128xf32> to vector<1x128xf32>
    %164 = vector.broadcast %163 : vector<1x128xf32> to vector<8x128xf32>
    %165 = arith.mulf %161, %164 : vector<8x128xf32>
    %166 = arith.addf %158, %165 : vector<8x128xf32>
    %c4_139 = arith.constant 4 : index
    %c0_140 = arith.constant 0 : index
    %c0_141 = arith.constant 0 : index
    %167 = vector.load %arg18[%c4_139, %c0_140, %c0_141] : memref<5x8x8xf32, #tpu.memory_space<vmem>>, vector<1x8x8xf32>
    %168 = vector.shape_cast %167 : vector<1x8x8xf32> to vector<8x8xf32>
    %cst_142 = arith.constant dense<0.000000e+00> : vector<8x128xf32>
    %169 = tpu.matmul %168, %135, %cst_142 {dimension_numbers = #tpu.dot_dimension_numbers<[1], [0], [0], [1], [0, 0, 1, 1], [], []>} : vector<8x8xf32>, vector<8x128xf32>, vector<8x128xf32> -> vector<8x128xf32>
    %c4_143 = arith.constant 4 : index
    %c0_144 = arith.constant 0 : index
    %c0_145 = arith.constant 0 : index
    %170 = vector.load %arg19[%c4_143, %c0_144, %c0_145] : memref<5x1x128xf32, #tpu.memory_space<vmem>>, vector<1x1x128xf32>
    %171 = vector.shape_cast %170 : vector<1x1x128xf32> to vector<1x128xf32>
    %172 = vector.broadcast %171 : vector<1x128xf32> to vector<8x128xf32>
    %173 = arith.mulf %169, %172 : vector<8x128xf32>
    %174 = arith.addf %166, %173 : vector<8x128xf32>
    %c0_146 = arith.constant 0 : index
    %c0_147 = arith.constant 0 : index
    %175 = vector.load %arg20[%c0_146, %c0_147] : memref<1x128xf32, #tpu.memory_space<vmem>>, vector<1x128xf32>
    %176 = vector.broadcast %175 : vector<1x128xf32> to vector<8x128xf32>
    %177 = arith.addf %174, %176 : vector<8x128xf32>
    %178 = arith.truncf %177 : vector<8x128xf32> to vector<8x128xbf16>
    %c0_148 = arith.constant 0 : index
    %c0_149 = arith.constant 0 : index
    %179 = vector.load %arg21[%c0_148, %c0_149] : memref<128x256xbf16, #tpu.memory_space<vmem>>, vector<128x256xbf16>
    %cst_150 = arith.constant dense<0.000000e+00> : vector<8x256xf32>
    %180 = tpu.matmul %178, %179, %cst_150 {dimension_numbers = #tpu.dot_dimension_numbers<[1], [0], [0], [1], [0, 0, 1, 1], [], []>} : vector<8x128xbf16>, vector<128x256xbf16>, vector<8x256xf32> -> vector<8x256xf32>
    %c0_151 = arith.constant 0 : index
    %c0_152 = arith.constant 0 : index
    %181 = vector.load %arg22[%c0_151, %c0_152] : memref<1x256xf32, #tpu.memory_space<vmem>>, vector<1x256xf32>
    %182 = vector.broadcast %181 : vector<1x256xf32> to vector<8x256xf32>
    %183 = arith.addf %180, %182 : vector<8x256xf32>
    %cst_153 = arith.constant 5.000000e-01 : f32
    %184 = vector.broadcast %cst_153 : f32 to vector<8x256xf32>
    %185 = arith.mulf %184, %183 : vector<8x256xf32>
    %cst_154 = arith.constant 0.707106769 : f32
    %186 = vector.broadcast %cst_154 : f32 to vector<8x256xf32>
    %187 = arith.mulf %183, %186 : vector<8x256xf32>
    %188 = math.erf %187 : vector<8x256xf32>
    %cst_155 = arith.constant 1.000000e+00 : f32
    %189 = vector.broadcast %cst_155 : f32 to vector<8x256xf32>
    %190 = arith.addf %189, %188 : vector<8x256xf32>
    %191 = arith.mulf %185, %190 : vector<8x256xf32>
    %192 = arith.truncf %191 : vector<8x256xf32> to vector<8x256xbf16>
    %c0_156 = arith.constant 0 : index
    %c0_157 = arith.constant 0 : index
    %193 = vector.load %arg23[%c0_156, %c0_157] : memref<256x128xbf16, #tpu.memory_space<vmem>>, vector<256x128xbf16>
    %cst_158 = arith.constant dense<0.000000e+00> : vector<8x128xf32>
    %194 = tpu.matmul %192, %193, %cst_158 {dimension_numbers = #tpu.dot_dimension_numbers<[1], [0], [0], [1], [0, 0, 1, 1], [], []>} : vector<8x256xbf16>, vector<256x128xbf16>, vector<8x128xf32> -> vector<8x128xf32>
    %c0_159 = arith.constant 0 : index
    %c0_160 = arith.constant 0 : index
    %195 = vector.load %arg24[%c0_159, %c0_160] : memref<1x128xf32, #tpu.memory_space<vmem>>, vector<1x128xf32>
    %196 = vector.broadcast %195 : vector<1x128xf32> to vector<8x128xf32>
    %197 = arith.addf %194, %196 : vector<8x128xf32>
    %198 = arith.truncf %197 : vector<8x128xf32> to vector<8x128xbf16>
    %c0_161 = arith.constant 0 : index
    %c0_162 = arith.constant 0 : index
    %199 = vector.load %arg25[%c0_161, %c0_162] : memref<128x256xbf16, #tpu.memory_space<vmem>>, vector<128x256xbf16>
    %cst_163 = arith.constant dense<0.000000e+00> : vector<8x256xf32>
    %200 = tpu.matmul %198, %199, %cst_163 {dimension_numbers = #tpu.dot_dimension_numbers<[1], [0], [0], [1], [0, 0, 1, 1], [], []>} : vector<8x128xbf16>, vector<128x256xbf16>, vector<8x256xf32> -> vector<8x256xf32>
    %c0_164 = arith.constant 0 : index
    %c0_165 = arith.constant 0 : index
    %201 = vector.load %arg26[%c0_164, %c0_165] : memref<1x256xf32, #tpu.memory_space<vmem>>, vector<1x256xf32>
    %202 = vector.broadcast %201 : vector<1x256xf32> to vector<8x256xf32>
    %203 = arith.addf %200, %202 : vector<8x256xf32>
    %cst_166 = arith.constant 5.000000e-01 : f32
    %204 = vector.broadcast %cst_166 : f32 to vector<8x256xf32>
    %205 = arith.mulf %204, %203 : vector<8x256xf32>
    %cst_167 = arith.constant 0.707106769 : f32
    %206 = vector.broadcast %cst_167 : f32 to vector<8x256xf32>
    %207 = arith.mulf %203, %206 : vector<8x256xf32>
    %208 = math.erf %207 : vector<8x256xf32>
    %cst_168 = arith.constant 1.000000e+00 : f32
    %209 = vector.broadcast %cst_168 : f32 to vector<8x256xf32>
    %210 = arith.addf %209, %208 : vector<8x256xf32>
    %211 = arith.mulf %205, %210 : vector<8x256xf32>
    %212 = arith.truncf %211 : vector<8x256xf32> to vector<8x256xbf16>
    %c0_169 = arith.constant 0 : index
    %c0_170 = arith.constant 0 : index
    %213 = vector.load %arg27[%c0_169, %c0_170] : memref<256x128xbf16, #tpu.memory_space<vmem>>, vector<256x128xbf16>
    %cst_171 = arith.constant dense<0.000000e+00> : vector<8x128xf32>
    %214 = tpu.matmul %212, %213, %cst_171 {dimension_numbers = #tpu.dot_dimension_numbers<[1], [0], [0], [1], [0, 0, 1, 1], [], []>} : vector<8x256xbf16>, vector<256x128xbf16>, vector<8x128xf32> -> vector<8x128xf32>
    %c0_172 = arith.constant 0 : index
    %c0_173 = arith.constant 0 : index
    %215 = vector.load %arg28[%c0_172, %c0_173] : memref<1x128xf32, #tpu.memory_space<vmem>>, vector<1x128xf32>
    %216 = vector.broadcast %215 : vector<1x128xf32> to vector<8x128xf32>
    %217 = arith.addf %214, %216 : vector<8x128xf32>
    %218 = arith.addf %135, %217 : vector<8x128xf32>
    %c0_174 = arith.constant 0 : index
    %c0_175 = arith.constant 0 : index
    %219 = vector.load %arg29[%c0_174, %c0_175] : memref<8x128xf32, #tpu.memory_space<vmem>>, vector<8x128xf32>
    tpu.vector_store %arg29[%c0_174, %c0_175], %218 {strides = array<i32>} : memref<8x128xf32, #tpu.memory_space<vmem>>, vector<8x128xf32>,
    return
  }
}

</mosaic_0001>

<bundles_post_ra>
// kernel: moderntcn_forward.1
= control target key start
LH: loop header
LB: loop body
LE: loop exit
PB: predicated region body
PF: predicated region fallthrough
CT: control target
= control target key end

     0   :  { %s4656_s6 = smov 1   ;;  %s4657_s10 = smov 2   ;;  %s5257_s0 = inlined_call_operand.smem [shape: u32[30], index: -1, kind: input, shape index: {}] }
   0x1   :  { %s4726_s5 = sld [smem:[%s5257_s0]]   ;;  %s4658_s14 = smov 3  }
   0x2   :  { %s4731_s9 = sld [smem:[%s5257_s0 + %s4656_s6]]   ;;  %s4659_s18 = smov 4  }
   0x3   :  { %s4736_s13 = sld [smem:[%s5257_s0 + %s4657_s10]]   ;;  %s4660_s22 = smov 5  }
   0x4   :  { %s4741_s17 = sld [smem:[%s5257_s0 + %s4658_s14]]   ;;  %s4661_s26 = smov 6  }
   0x5   :  { %s4746_s21 = sld [smem:[%s5257_s0 + %s4659_s18]]   ;;  %s4662_s30 = smov 7  }
   0x6   :  { %s4751_s25 = sld [smem:[%s5257_s0 + %s4660_s22]]   ;;  %s4663_s4 = smov 8  }
   0x7   :  { %5269 = sst [smem:[#allocation45_spill]] %s4726_s5  ;;  %s4664_s10 = smov 9  }
   0x8   :  { %s4756_s29 = sld [smem:[%s5257_s0 + %s4661_s26]]   ;;  %s4665_s15 = smov 10  }
   0x9   :  { %s4761_s3 = sld [smem:[%s5257_s0 + %s4662_s30]]   ;;  %s4666_s20 = smov 11  }
   0xa   :  { %s4766_s8 = sld [smem:[%s5257_s0 + %s4663_s4]]   ;;  %s4667_s26 = smov 12  }
   0xb   :  { %5270 = sst [smem:[#allocation46_spill]] %s4746_s21  ;;  %s4668_s1 = smov 13  }
   0xc   :  { %s4771_s14 = sld [smem:[%s5257_s0 + %s4664_s10]]   ;;  %s4669_s7 = smov 14  }
   0xd   :  { %s4776_s19 = sld [smem:[%s5257_s0 + %s4665_s15]]   ;;  %s4670_s15 = smov 15  }
   0xe   :  { %s4781_s24 = sld [smem:[%s5257_s0 + %s4666_s20]]   ;;  %s4671_s22 = smov 16  }
   0xf   :  { %s4786_s30 = sld [smem:[%s5257_s0 + %s4667_s26]]   ;;  %s4672_s28 = smov 17  }
  0x10   :  { %s4791_s6 = sld [smem:[%s5257_s0 + %s4668_s1]]  }
  0x11   :  { %s4796_s12 = sld [smem:[%s5257_s0 + %s4669_s7]]   ;;  %s4673_s7 = smov 18  }
  0x12   :  { %5271 = sst [smem:[#allocation47_spill]] %s4771_s14 }
  0x13   :  { %s4801_s20 = sld [smem:[%s5257_s0 + %s4670_s15]]   ;;  %s4674_s15 = smov 19  }
  0x14   :  { %s4806_s27 = sld [smem:[%s5257_s0 + %s4671_s22]]   ;;  %s4675_s22 = smov 20  }
  0x15   :  { %s4811_s4 = sld [smem:[%s5257_s0 + %s4672_s28]]   ;;  %s4676_s28 = smov 21  }
  0x16   :  { %5272 = sst [smem:[#allocation48_spill]] %s4791_s6 }
  0x17   :  { %5273 = sst [smem:[#allocation49_spill]] %s4796_s12 }
  0x18   :  { %s4816_s6 = sld [smem:[%s5257_s0 + %s4673_s7]]   ;;  %s4677_s7 = smov 22  }
  0x19   :  { %5274 = sst [smem:[#allocation50_spill]] %s4801_s20 }
  0x1a   :  { %s4821_s20 = sld [smem:[%s5257_s0 + %s4674_s15]]   ;;  %s4678_s15 = smov 23  }
  0x1b   :  { %5275 = sst [smem:[#allocation51_spill]] %s4811_s4 }
  0x1c   :  { %s4826_s14 = sld [smem:[%s5257_s0 + %s4675_s22]]   ;;  %s4679_s22 = smov 24  }
  0x1d   :  { %s4831_s21 = sld [smem:[%s5257_s0 + %s4676_s28]]   ;;  %s4680_s28 = smov 25  }
  0x1e   :  { %s4836_s5 = sld [smem:[%s5257_s0 + %s4677_s7]]   ;;  %s4681_s7 = smov 26  }
  0x1f   :  { %s4846_s4 = sld [smem:[%s5257_s0 + %s4679_s22]]   ;;  %s4683_s22 = smov 28  }
  0x20   :  { %5276 = sst [smem:[#allocation52_spill]] %s4821_s20 }
  0x21   :  { %s4841_s20 = sld [smem:[%s5257_s0 + %s4678_s15]]   ;;  %s4682_s15 = smov 27  }
  0x23   :  { %5277 = sst [smem:[#allocation53_spill]] %s4831_s21 }
  0x24   :  { %5278 = sst [smem:[#allocation54_spill]] %s4836_s5 }
  0x25   :  { %5280 = sst [smem:[#allocation56_spill]] %s4846_s4 }
  0x26   :  { %s4851_s21 = sld [smem:[%s5257_s0 + %s4680_s28]]   ;;  %s4684_s28 = smov 29  }
  0x27   :  { %5279 = sst [smem:[#allocation55_spill]] %s4841_s20 }
  0x28   :  { %s4856_s5 = sld [smem:[%s5257_s0 + %s4681_s7]]  }
  0x29   :  { %s4861_s20 = sld [smem:[%s5257_s0 + %s4682_s15]]  }
  0x2a   :  { %s4866_s4 = sld [smem:[%s5257_s0 + %s4683_s22]]  }
  0x2b   :  { %s4871_s12 = sld [smem:[%s5257_s0 + %s4684_s28]]  }
  0x2c   :  { %64 = vsyncpa [#allocation3], 0 }
  0x2d   :  { %65 = vsyncpa [#allocation5], 0 }
  0x2e   :  { %66 = vsyncpa [#allocation8], 0 }
  0x2f   :  { %67 = vsyncpa [#allocation11], 0 }
  0x30   :  { %68 = vsyncpa [#allocation14], 0 }
  0x31   :  { %69 = vsyncpa [#allocation17], 0 }
  0x32   :  { %70 = vsyncpa [#allocation20], 0 }
  0x33   :  { %71 = vsyncpa [#allocation23], 0 }
  0x34   :  { %72 = vsyncpa [#allocation26], 0 }
  0x35   :  { %73 = vsyncpa [#allocation29], 0 }
  0x36   :  { %74 = vsyncpa [#allocation32], 0  ;;  %s4685_s7 = smov [#allocation4]   ;;  %s4172_s11 = scalar_lea.hbm %s4736_s13, 128 }
  0x37   :  { %s94_s10 = sshll.u32 %s4685_s7, 4  ;;  %p4173_p0 = scmp.ne.s32.totalorder %s4736_s13, %s4172_s11  ;;  %s95_s10 = int_to_ptr.vmem [resolvable:$true] %s94_s10 }
  0x38   :  { %p4176_p1 = scmp.lt.u32.totalorder %s4172_s11, %s4736_s13 }
  0x3a   :  { %p4178_p2 = pnand %p4176_p1, %p4173_p0 }
  0x3c   :  { %4181 = shalt.err (!%p4178_p2)
}
  0x3d   :  { %s4182_s0 = scalar_lea.vmem %s95_s10, 128  ;;  %p4187_p4 = scmp.lt.s32.totalorder %s95_s10, %s95_s10 }
  0x3e   :  { %p4183_p3 = scmp.ne.s32.totalorder %s95_s10, %s4182_s0  ;;  %p4188_p5 = scmp.lt.s32.totalorder %s4182_s0, %s4182_s0 }
  0x40   :  { %p4189_p6 = por %p4188_p5, %p4187_p4 }
  0x42   :  { %p4190_p7 = pnand %p4189_p6, %p4183_p3 }
  0x44   :  { %4193 = shalt.err (!%p4190_p7)
}
  0x45   :  { %s4686_s15 = smov 32   ;;  %s4687_s16 = smov 2  }
  0x46   :  { %100 = dma.hbm_to_vmem [thread:$0]  %s4736_s13, 128, %s95_s10, [#allocation5], %s4686_s15, %s4686_s15, %s4687_s16  }
  0x47   :  { %s4688_s18 = smov [#allocation7]   ;;  %s4194_s23 = scalar_lea.hbm %s4751_s25, 80 }
  0x48   :  { %s118_s22 = sshll.u32 %s4688_s18, 4  ;;  %p4195_p8 = scmp.ne.s32.totalorder %s4751_s25, %s4194_s23  ;;  %s119_s22 = int_to_ptr.vmem [resolvable:$true] %s118_s22 }
  0x49   :  { %p4198_p9 = scmp.lt.u32.totalorder %s4194_s23, %s4751_s25 }
  0x4b   :  { %p4200_p10 = pnand %p4198_p9, %p4195_p8 }
  0x4d   :  { %4203 = shalt.err (!%p4200_p10)
}
  0x4e   :  { %s4204_s26 = scalar_lea.vmem %s119_s22, 80  ;;  %s4208_s28 = scalar_lea.vmem %s119_s22, 96 }
  0x4f   :  { %p4205_p11 = scmp.ne.s32.totalorder %s119_s22, %s4204_s26  ;;  %p4209_p12 = scmp.lt.s32.totalorder %s119_s22, %s119_s22 }
  0x50   :  { %p4210_p13 = scmp.lt.s32.totalorder %s4208_s28, %s4204_s26 }
  0x52   :  { %p4211_p0 = por %p4210_p13, %p4209_p12 }
  0x54   :  { %p4212_p1 = pnand %p4211_p0, %p4205_p11 }
  0x56   :  { %4215 = shalt.err (!%p4212_p1)
}
  0x57   :  { %s4689_s1 = smov 16   ;;  %s4690_s13 = smov 1  }
  0x58   :  { %124 = dma.hbm_to_vmem [thread:$0]  %s4751_s25, 80, %s119_s22, [#allocation8], %s4689_s1, %s4689_s1, %s4690_s13  }
  0x59   :  { %s4691_s2 = smov [#allocation10]   ;;  %s4216_s10 = scalar_lea.hbm %s4761_s3, 512 }
  0x5a   :  { %s140_s7 = sshll.u32 %s4691_s2, 4  ;;  %p4217_p2 = scmp.ne.s32.totalorder %s4761_s3, %s4216_s10  ;;  %s141_s7 = int_to_ptr.vmem [resolvable:$true] %s140_s7 }
  0x5b   :  { %p4220_p3 = scmp.lt.u32.totalorder %s4216_s10, %s4761_s3 }
  0x5d   :  { %p4222_p4 = pnand %p4220_p3, %p4217_p2 }
  0x5f   :  { %4225 = shalt.err (!%p4222_p4)
}
  0x60   :  { %s4226_s11 = scalar_lea.vmem %s141_s7, 512  ;;  %p4231_p6 = scmp.lt.s32.totalorder %s141_s7, %s141_s7 }
  0x61   :  { %p4227_p5 = scmp.ne.s32.totalorder %s141_s7, %s4226_s11  ;;  %p4232_p7 = scmp.lt.s32.totalorder %s4226_s11, %s4226_s11 }
  0x63   :  { %p4233_p8 = por %p4232_p7, %p4231_p6 }
  0x65   :  { %p4234_p9 = pnand %p4233_p8, %p4227_p5 }
  0x67   :  { %4237 = shalt.err (!%p4234_p9)
}
  0x68   :  { %s4692_s0 = smov 64   ;;  %s4693_s25 = smov 4  }
  0x69   :  { %146 = dma.hbm_to_vmem [thread:$0]  %s4761_s3, 512, %s141_s7, [#allocation11], %s4692_s0, %s4692_s0, %s4693_s25  }
  0x6a   :  { %s4694_s15 = smov [#allocation13]   ;;  %s4695_s18 = smov [#allocation16]  }
  0x6b   :  { %s165_s16 = sshll.u32 %s4694_s15, 4  ;;  %s187_s22 = sshll.u32 %s4695_s18, 4  ;;  %s166_s16 = int_to_ptr.vmem [resolvable:$true] %s165_s16  ;;  %s188_s22 = int_to_ptr.vmem [resolvable:$true] %s187_s22 }
  0x6c   :  { %s4238_s23 = scalar_lea.hbm %s4776_s19, 16 }
  0x6d   :  { %p4239_p10 = scmp.ne.s32.totalorder %s4776_s19, %s4238_s23  ;;  %p4242_p11 = scmp.lt.u32.totalorder %s4238_s23, %s4776_s19 }
  0x6f   :  { %p4244_p12 = pnand %p4242_p11, %p4239_p10 }
  0x71   :  { %4247 = shalt.err (!%p4244_p12)
}
  0x72   :  { %s4248_s26 = scalar_lea.vmem %s166_s16, 16  ;;  %s4252_s28 = scalar_lea.vmem %s166_s16, 32 }
  0x73   :  { %p4249_p13 = scmp.ne.s32.totalorder %s166_s16, %s4248_s26  ;;  %p4253_p0 = scmp.lt.s32.totalorder %s166_s16, %s166_s16 }
  0x74   :  { %p4254_p1 = scmp.lt.s32.totalorder %s4252_s28, %s4248_s26 }
  0x76   :  { %p4255_p2 = por %p4254_p1, %p4253_p0 }
  0x78   :  { %p4256_p3 = pnand %p4255_p2, %p4249_p13 }
  0x7a   :  { %4259 = shalt.err (!%p4256_p3)
}
  0x7b   :  { %168 = dma.hbm_to_vmem [thread:$0]  %s4776_s19, 16, %s166_s16, [#allocation14]  }
  0x7c   :  { %s4260_s3 = scalar_lea.hbm %s4786_s30, 16 }
  0x7d   :  { %p4261_p4 = scmp.ne.s32.totalorder %s4786_s30, %s4260_s3  ;;  %p4264_p5 = scmp.lt.u32.totalorder %s4260_s3, %s4786_s30 }
  0x7f   :  { %p4266_p6 = pnand %p4264_p5, %p4261_p4 }
  0x81   :  { %4269 = shalt.err (!%p4266_p6)
}
  0x82   :  { %s4270_s2 = scalar_lea.vmem %s188_s22, 16  ;;  %s4274_s7 = scalar_lea.vmem %s188_s22, 32 }
  0x83   :  { %p4271_p7 = scmp.ne.s32.totalorder %s188_s22, %s4270_s2  ;;  %p4275_p8 = scmp.lt.s32.totalorder %s188_s22, %s188_s22 }
  0x84   :  { %p4276_p9 = scmp.lt.s32.totalorder %s4274_s7, %s4270_s2 }
  0x86   :  { %p4277_p10 = por %p4276_p9, %p4275_p8 }
  0x88   :  { %p4278_p11 = pnand %p4277_p10, %p4271_p7 }
  0x8a   :  { %4281 = shalt.err (!%p4278_p11)
}
  0x8b   :  { %190 = dma.hbm_to_vmem [thread:$0]  %s4786_s30, 16, %s188_s22, [#allocation17]  }
  0x8c   :  { %s4696_s19 = smov [#allocation19]   ;;  %s4282_s11 = scalar_lea.hbm %s4806_s27, 1024 }
  0x8d   :  { %s210_s10 = sshll.u32 %s4696_s19, 4  ;;  %p4283_p12 = scmp.ne.s32.totalorder %s4806_s27, %s4282_s11  ;;  %s211_s10 = int_to_ptr.vmem [resolvable:$true] %s210_s10 }
  0x8e   :  { %p4286_p13 = scmp.lt.u32.totalorder %s4282_s11, %s4806_s27 }
  0x90   :  { %p4288_p0 = pnand %p4286_p13, %p4283_p12 }
  0x92   :  { %4291 = shalt.err (!%p4288_p0)
}
  0x93   :  { %s4292_s15 = scalar_lea.vmem %s211_s10, 1024  ;;  %p4297_p2 = scmp.lt.s32.totalorder %s211_s10, %s211_s10 }
  0x94   :  { %p4293_p1 = scmp.ne.s32.totalorder %s211_s10, %s4292_s15  ;;  %p4298_p3 = scmp.lt.s32.totalorder %s4292_s15, %s4292_s15 }
  0x96   :  { %p4299_p4 = por %p4298_p3, %p4297_p2 }
  0x98   :  { %p4300_p5 = pnand %p4299_p4, %p4293_p1 }
  0x9a   :  { %4303 = shalt.err (!%p4300_p5)
}
  0x9b   :  { %216 = dma.hbm_to_vmem [thread:$0]  %s4806_s27, 1024, %s211_s10, [#allocation20], %s4692_s0, %s4692_s0, %s4693_s25  }
  0x9c   :  { %s4697_s30 = smov [#allocation22]   ;;  %s4698_s18 = smov [#allocation25]  }
  0x9d   :  { %s232_s16 = sshll.u32 %s4697_s30, 4  ;;  %s257_s22 = sshll.u32 %s4698_s18, 4  ;;  %s233_s16 = int_to_ptr.vmem [resolvable:$true] %s232_s16  ;;  %s4906_s22 = int_to_ptr.vmem [resolvable:$true] %s257_s22 }
  0x9e   :  { %s4304_s23 = scalar_lea.hbm %s4816_s6, 640 }
  0x9f   :  { %p4305_p6 = scmp.ne.s32.totalorder %s4816_s6, %s4304_s23  ;;  %p4308_p7 = scmp.lt.u32.totalorder %s4304_s23, %s4816_s6 }
  0xa1   :  { %p4310_p8 = pnand %p4308_p7, %p4305_p6 }
  0xa3   :  { %4313 = shalt.err (!%p4310_p8)
}
  0xa4   :  { %s4314_s26 = scalar_lea.vmem %s233_s16, 640  ;;  %p4319_p10 = scmp.lt.s32.totalorder %s233_s16, %s233_s16 }
  0xa5   :  { %p4315_p9 = scmp.ne.s32.totalorder %s233_s16, %s4314_s26  ;;  %p4320_p11 = scmp.lt.s32.totalorder %s4314_s26, %s4314_s26 }
  0xa7   :  { %p4321_p12 = por %p4320_p11, %p4319_p10 }
  0xa9   :  { %p4322_p13 = pnand %p4321_p12, %p4315_p9 }
  0xab   :  { %4325 = shalt.err (!%p4322_p13)
}
  0xac   :  { %s4699_s27 = smov 128   ;;  %s4700_s28 = smov 8  }
  0xad   :  { %238 = dma.hbm_to_vmem [thread:$0]  %s4816_s6, 640, %s233_s16, [#allocation23], %s4699_s27, %s4699_s27, %s4700_s28  }
  0xae   :  { %s4326_s3 = scalar_lea.hbm %s4826_s14, 16 }
  0xaf   :  { %p4327_p0 = scmp.ne.s32.totalorder %s4826_s14, %s4326_s3  ;;  %p4330_p1 = scmp.lt.u32.totalorder %s4326_s3, %s4826_s14 }
  0xb1   :  { %p4332_p2 = pnand %p4330_p1, %p4327_p0 }
  0xb3   :  { %4335 = shalt.err (!%p4332_p2)
}
  0xb4   :  { %s4336_s2 = scalar_lea.vmem %s4906_s22, 16  ;;  %s4340_s7 = scalar_lea.vmem %s4906_s22, 32 }
  0xb5   :  { %p4337_p3 = scmp.ne.s32.totalorder %s4906_s22, %s4336_s2  ;;  %p4341_p4 = scmp.lt.s32.totalorder %s4906_s22, %s4906_s22 }
  0xb6   :  { %p4342_p5 = scmp.lt.s32.totalorder %s4340_s7, %s4336_s2 }
  0xb8   :  { %p4343_p6 = por %p4342_p5, %p4341_p4 }
  0xba   :  { %p4344_p7 = pnand %p4343_p6, %p4337_p3 }
  0xbc   :  { %4347 = shalt.err (!%p4344_p7)
}
  0xbd   :  { %260 = dma.hbm_to_vmem [thread:$0]  %s4826_s14, 16, %s4906_s22, [#allocation26]  }
  0xbe   :  { %s4701_s6 = smov [#allocation28]   ;;  %s4702_s10 = smov [#allocation31]  }
  0xbf   :  { %s282_s19 = sshll.u32 %s4701_s6, 4  ;;  %s304_s11 = sshll.u32 %s4702_s10, 4  ;;  %s283_s19 = int_to_ptr.vmem [resolvable:$true] %s282_s19  ;;  %s4925_s11 = int_to_ptr.vmem [resolvable:$true] %s304_s11 }
  0xc0   :  { %s4348_s15 = scalar_lea.hbm %s4851_s21, 2048 }
  0xc1   :  { %p4349_p8 = scmp.ne.s32.totalorder %s4851_s21, %s4348_s15  ;;  %p4352_p9 = scmp.lt.u32.totalorder %s4348_s15, %s4851_s21 }
  0xc3   :  { %p4354_p10 = pnand %p4352_p9, %p4349_p8 }
  0xc5   :  { %4357 = shalt.err (!%p4354_p10)
}
  0xc6   :  { %s4358_s30 = scalar_lea.vmem %s283_s19, 2048  ;;  %p4363_p12 = scmp.lt.s32.totalorder %s283_s19, %s283_s19 }
  0xc7   :  { %p4359_p11 = scmp.ne.s32.totalorder %s283_s19, %s4358_s30  ;;  %p4364_p13 = scmp.lt.s32.totalorder %s4358_s30, %s4358_s30 }
  0xc9   :  { %p4365_p0 = por %p4364_p13, %p4363_p12 }
  0xcb   :  { %p4366_p1 = pnand %p4365_p0, %p4359_p11 }
  0xcd   :  { %4369 = shalt.err (!%p4366_p1)
}
  0xce   :  { %288 = dma.hbm_to_vmem [thread:$0]  %s4851_s21, 2048, %s283_s19, [#allocation29], %s4699_s27, %s4699_s27, %s4700_s28  }
  0xcf   :  { %s4370_s14 = scalar_lea.hbm %s4861_s20, 2048 }
  0xd0   :  { %p4371_p2 = scmp.ne.s32.totalorder %s4861_s20, %s4370_s14  ;;  %p4374_p3 = scmp.lt.u32.totalorder %s4370_s14, %s4861_s20 }
  0xd2   :  { %p4376_p4 = pnand %p4374_p3, %p4371_p2 }
  0xd4   :  { %4379 = shalt.err (!%p4376_p4)
}
  0xd5   :  { %s4380_s16 = scalar_lea.vmem %s4925_s11, 2048  ;;  %p4385_p6 = scmp.lt.s32.totalorder %s4925_s11, %s4925_s11 }
  0xd6   :  { %p4381_p5 = scmp.ne.s32.totalorder %s4925_s11, %s4380_s16  ;;  %p4386_p7 = scmp.lt.s32.totalorder %s4380_s16, %s4380_s16 }
  0xd8   :  { %p4387_p8 = por %p4386_p7, %p4385_p6 }
  0xda   :  { %p4388_p9 = pnand %p4387_p8, %p4381_p5 }
  0xdc   :  { %4391 = shalt.err (!%p4388_p9)
}
  0xdd   :  { %310 = dma.hbm_to_vmem [thread:$0]  %s4861_s20, 2048, %s4925_s11, [#allocation32], %s4692_s0, %s4692_s0, %s4693_s25  }
  0xde   :  { %s4703_s21 = smov [#allocation2]   ;;  %s4704_s22 = smov [#allocation6]  }
  0xdf   :  { %s82_s18 = sshll.u32 %s4703_s21, 4  ;;  %s107_s23 = sshll.u32 %s4704_s22, 4  ;;  %s83_s18 = int_to_ptr.vmem [resolvable:$true] %s82_s18  ;;  %s108_s23 = int_to_ptr.vmem [resolvable:$true] %s107_s23 }
  0xe0   :  { %s4392_s26 = scalar_lea.hbm %s4731_s9, 1024 }
  0xe1   :  { %p4393_p10 = scmp.ne.s32.totalorder %s4731_s9, %s4392_s26  ;;  %p4396_p11 = scmp.lt.u32.totalorder %s4392_s26, %s4731_s9 }
  0xe3   :  { %p4398_p12 = pnand %p4396_p11, %p4393_p10 }
  0xe5   :  { %4401 = shalt.err (!%p4398_p12)
}
  0xe6   :  { %s4402_s3 = scalar_lea.vmem %s83_s18, 1024  ;;  %p4407_p0 = scmp.lt.s32.totalorder %s83_s18, %s83_s18 }
  0xe7   :  { %p4403_p13 = scmp.ne.s32.totalorder %s83_s18, %s4402_s3  ;;  %p4408_p1 = scmp.lt.s32.totalorder %s4402_s3, %s4402_s3 }
  0xe9   :  { %p4409_p2 = por %p4408_p1, %p4407_p0 }
  0xeb   :  { %p4410_p3 = pnand %p4409_p2, %p4403_p13 }
  0xed   :  { %4413 = shalt.err (!%p4410_p3)
}
  0xee   :  { %88 = dma.hbm_to_vmem [thread:$0]  %s4731_s9, 1024, %s83_s18, [#allocation3], %s4699_s27, %s4699_s27, %s4700_s28  }
  0xef   :  { %s4414_s20 = scalar_lea.hbm %s4741_s17, 16 }
  0xf0   :  { %p4415_p4 = scmp.ne.s32.totalorder %s4741_s17, %s4414_s20  ;;  %p4418_p5 = scmp.lt.u32.totalorder %s4414_s20, %s4741_s17 }
  0xf2   :  { %p4420_p6 = pnand %p4418_p5, %p4415_p4 }
  0xf4   :  { %4423 = shalt.err (!%p4420_p6)
}
  0xf5   :  { %s4424_s2 = scalar_lea.vmem %s108_s23, 16  ;;  %s4428_s7 = scalar_lea.vmem %s108_s23, 32 }
  0xf6   :  { %p4425_p7 = scmp.ne.s32.totalorder %s108_s23, %s4424_s2  ;;  %p4429_p8 = scmp.lt.s32.totalorder %s108_s23, %s108_s23 }
  0xf7   :  { %p4430_p9 = scmp.lt.s32.totalorder %s4428_s7, %s4424_s2 }
  0xf9   :  { %p4431_p10 = por %p4430_p9, %p4429_p8 }
  0xfb   :  { %p4432_p11 = pnand %p4431_p10, %p4425_p7 }
  0xfd   :  { %4435 = shalt.err (!%p4432_p11)
}
  0xfe   :  { %110 = dma.hbm_to_vmem [thread:$0]  %s4741_s17, 16, %s108_s23, [#allocation5]  }
  0xff   :  { %s4705_s6 = smov [#allocation9]   ;;  %s4706_s27 = smov [#allocation12]  }
 0x100   :  { %s131_s9 = sshll.u32 %s4705_s6, 4  ;;  %s153_s28 = sshll.u32 %s4706_s27, 4  ;;  %s132_s9 = int_to_ptr.vmem [resolvable:$true] %s131_s9  ;;  %s154_s28 = int_to_ptr.vmem [resolvable:$true] %s153_s28 }
 0x101   :  { %s4436_s19 = scalar_lea.hbm %s4756_s29, 16 }
 0x102   :  { %p4437_p12 = scmp.ne.s32.totalorder %s4756_s29, %s4436_s19  ;;  %p4440_p13 = scmp.lt.u32.totalorder %s4436_s19, %s4756_s29 }
 0x104   :  { %p4442_p0 = pnand %p4440_p13, %p4437_p12 }
 0x106   :  { %4445 = shalt.err (!%p4442_p0)
}
 0x107   :  { %s4446_s10 = scalar_lea.vmem %s132_s9, 16  ;;  %s4450_s11 = scalar_lea.vmem %s132_s9, 32 }
 0x108   :  { %p4447_p1 = scmp.ne.s32.totalorder %s132_s9, %s4446_s10  ;;  %p4451_p2 = scmp.lt.s32.totalorder %s132_s9, %s132_s9 }
 0x109   :  { %p4452_p3 = scmp.lt.s32.totalorder %s4450_s11, %s4446_s10 }
 0x10b   :  { %p4453_p4 = por %p4452_p3, %p4451_p2 }
 0x10d   :  { %p4454_p5 = pnand %p4453_p4, %p4447_p1 }
 0x10f   :  { %4457 = shalt.err (!%p4454_p5)
}
 0x110   :  { %134 = dma.hbm_to_vmem [thread:$0]  %s4756_s29, 16, %s132_s9, [#allocation8]  }
 0x111   :  { %s4458_s17 = scalar_lea.hbm %s4766_s8, 16 }
 0x112   :  { %p4459_p6 = scmp.ne.s32.totalorder %s4766_s8, %s4458_s17  ;;  %p4462_p7 = scmp.lt.u32.totalorder %s4458_s17, %s4766_s8 }
 0x114   :  { %p4464_p8 = pnand %p4462_p7, %p4459_p6 }
 0x116   :  { %4467 = shalt.err (!%p4464_p8)
}
 0x117   :  { %s4468_s15 = scalar_lea.vmem %s154_s28, 16  ;;  %s4472_s30 = scalar_lea.vmem %s154_s28, 32 }
 0x118   :  { %p4469_p9 = scmp.ne.s32.totalorder %s154_s28, %s4468_s15  ;;  %p4473_p10 = scmp.lt.s32.totalorder %s154_s28, %s154_s28 }
 0x119   :  { %p4474_p11 = scmp.lt.s32.totalorder %s4472_s30, %s4468_s15 }
 0x11b   :  { %p4475_p12 = por %p4474_p11, %p4473_p10 }
 0x11d   :  { %p4476_p13 = pnand %p4475_p12, %p4469_p9 }
 0x11f   :  { %4479 = shalt.err (!%p4476_p13)
}
 0x120   :  { %156 = dma.hbm_to_vmem [thread:$0]  %s4766_s8, 16, %s154_s28, [#allocation11]  }
 0x121   :  { %s4707_s14 = smov [#allocation15]   ;;  %s4708_s16 = smov [#allocation18]  }
 0x122   :  { %s174_s29 = sshll.u32 %s4707_s14, 4  ;;  %s199_s21 = sshll.u32 %s4708_s16, 4  ;;  %s175_s29 = int_to_ptr.vmem [resolvable:$true] %s174_s29  ;;  %s200_s21 = int_to_ptr.vmem [resolvable:$true] %s199_s21 }
 0x123   :  { %s4480_s18 = scalar_lea.hbm %s4781_s24, 512 }
 0x124   :  { %p4481_p0 = scmp.ne.s32.totalorder %s4781_s24, %s4480_s18  ;;  %p4484_p1 = scmp.lt.u32.totalorder %s4480_s18, %s4781_s24 }
 0x126   :  { %p4486_p2 = pnand %p4484_p1, %p4481_p0 }
 0x128   :  { %4489 = shalt.err (!%p4486_p2)
}
 0x129   :  { %s4490_s22 = scalar_lea.vmem %s175_s29, 512  ;;  %p4495_p4 = scmp.lt.s32.totalorder %s175_s29, %s175_s29 }
 0x12a   :  { %p4491_p3 = scmp.ne.s32.totalorder %s175_s29, %s4490_s22  ;;  %p4496_p5 = scmp.lt.s32.totalorder %s4490_s22, %s4490_s22 }
 0x12c   :  { %p4497_p6 = por %p4496_p5, %p4495_p4 }
 0x12e   :  { %p4498_p7 = pnand %p4497_p6, %p4491_p3 }
 0x130   :  { %4501 = shalt.err (!%p4498_p7)
}
 0x131   :  { %s5281_s8 = sld [smem:[#allocation49_spill]] }
 0x132   :  { %180 = dma.hbm_to_vmem [thread:$0]  %s4781_s24, 512, %s175_s29, [#allocation14], %s4692_s0, %s4692_s0, %s4693_s25  }
 0x137   :  { %s4502_s23 = scalar_lea.hbm %s5281_s8, 16 }
 0x138   :  { %p4503_p8 = scmp.ne.s32.totalorder %s5281_s8, %s4502_s23  ;;  %p4506_p9 = scmp.lt.u32.totalorder %s4502_s23, %s5281_s8 }
 0x13a   :  { %p4508_p10 = pnand %p4506_p9, %p4503_p8 }
 0x13c   :  { %4511 = shalt.err (!%p4508_p10)
}
 0x13d   :  { %s4512_s26 = scalar_lea.vmem %s200_s21, 16  ;;  %s4516_s3 = scalar_lea.vmem %s200_s21, 32 }
 0x13e   :  { %p4513_p11 = scmp.ne.s32.totalorder %s200_s21, %s4512_s26  ;;  %p4517_p12 = scmp.lt.s32.totalorder %s200_s21, %s200_s21 }
 0x13f   :  { %p4518_p13 = scmp.lt.s32.totalorder %s4516_s3, %s4512_s26 }
 0x141   :  { %p4519_p0 = por %p4518_p13, %p4517_p12 }
 0x143   :  { %p4520_p1 = pnand %p4519_p0, %p4513_p11 }
 0x145   :  { %4523 = shalt.err (!%p4520_p1)
}
 0x146   :  { %s5282_s20 = sld [smem:[#allocation51_spill]]  ;;  %s4709_s2 = smov [#allocation21]  }
 0x147   :  { %202 = dma.hbm_to_vmem [thread:$0]  %s5281_s8, 16, %s200_s21, [#allocation17]  }
 0x148   :  { %s223_s24 = sshll.u32 %s4709_s2, 4  ;;  %s4710_s0 = smov [#allocation24]   ;;  %s224_s24 = int_to_ptr.vmem [resolvable:$true] %s223_s24 }
 0x149   :  { %s244_s25 = sshll.u32 %s4710_s0, 4  ;;  %s4976_s25 = int_to_ptr.vmem [resolvable:$true] %s244_s25 }
 0x14c   :  { %s4524_s7 = scalar_lea.hbm %s5282_s20, 16 }
 0x14d   :  { %p4525_p2 = scmp.ne.s32.totalorder %s5282_s20, %s4524_s7  ;;  %p4528_p3 = scmp.lt.u32.totalorder %s4524_s7, %s5282_s20 }
 0x14f   :  { %p4530_p4 = pnand %p4528_p3, %p4525_p2 }
 0x151   :  { %4533 = shalt.err (!%p4530_p4)
}
 0x152   :  { %s4534_s6 = scalar_lea.vmem %s224_s24, 16  ;;  %s4538_s9 = scalar_lea.vmem %s224_s24, 32 }
 0x153   :  { %p4535_p5 = scmp.ne.s32.totalorder %s224_s24, %s4534_s6  ;;  %p4539_p6 = scmp.lt.s32.totalorder %s224_s24, %s224_s24 }
 0x154   :  { %p4540_p7 = scmp.lt.s32.totalorder %s4538_s9, %s4534_s6 }
 0x156   :  { %p4541_p8 = por %p4540_p7, %p4539_p6 }
 0x158   :  { %p4542_p9 = pnand %p4541_p8, %p4535_p5 }
 0x15a   :  { %4545 = shalt.err (!%p4542_p9)
}
 0x15b   :  { %s5283_s27 = sld [smem:[#allocation52_spill]] }
 0x15c   :  { %226 = dma.hbm_to_vmem [thread:$0]  %s5282_s20, 16, %s224_s24, [#allocation20]  }
 0x161   :  { %s4546_s28 = scalar_lea.hbm %s5283_s27, 80 }
 0x162   :  { %p4547_p10 = scmp.ne.s32.totalorder %s5283_s27, %s4546_s28  ;;  %p4550_p11 = scmp.lt.u32.totalorder %s4546_s28, %s5283_s27 }
 0x164   :  { %p4552_p12 = pnand %p4550_p11, %p4547_p10 }
 0x166   :  { %4555 = shalt.err (!%p4552_p12)
}
 0x167   :  { %s4556_s19 = scalar_lea.vmem %s4976_s25, 80  ;;  %s4560_s10 = scalar_lea.vmem %s4976_s25, 96 }
 0x168   :  { %p4557_p13 = scmp.ne.s32.totalorder %s4976_s25, %s4556_s19  ;;  %p4561_p0 = scmp.lt.s32.totalorder %s4976_s25, %s4976_s25 }
 0x169   :  { %p4562_p1 = scmp.lt.s32.totalorder %s4560_s10, %s4556_s19 }
 0x16b   :  { %p4563_p2 = por %p4562_p1, %p4561_p0 }
 0x16d   :  { %p4564_p3 = pnand %p4563_p2, %p4557_p13 }
 0x16f   :  { %4567 = shalt.err (!%p4564_p3)
}
 0x170   :  { %s5284_s11 = sld [smem:[#allocation56_spill]]  ;;  %s4711_s17 = smov [#allocation27]  }
 0x171   :  { %250 = dma.hbm_to_vmem [thread:$0]  %s5283_s27, 80, %s4976_s25, [#allocation23], %s4689_s1, %s4689_s1, %s4690_s13  }
 0x172   :  { %s273_s15 = sshll.u32 %s4711_s17, 4  ;;  %s4712_s30 = smov [#allocation30]   ;;  %s274_s15 = int_to_ptr.vmem [resolvable:$true] %s273_s15 }
 0x173   :  { %s295_s14 = sshll.u32 %s4712_s30, 4  ;;  %s296_s14 = int_to_ptr.vmem [resolvable:$true] %s295_s14 }
 0x176   :  { %s4568_s29 = scalar_lea.hbm %s5284_s11, 16 }
 0x177   :  { %p4569_p4 = scmp.ne.s32.totalorder %s5284_s11, %s4568_s29  ;;  %p4572_p5 = scmp.lt.u32.totalorder %s4568_s29, %s5284_s11 }
 0x179   :  { %p4574_p6 = pnand %p4572_p5, %p4569_p4 }
 0x17b   :  { %4577 = shalt.err (!%p4574_p6)
}
 0x17c   :  { %s4578_s16 = scalar_lea.vmem %s274_s15, 16  ;;  %s4582_s21 = scalar_lea.vmem %s274_s15, 32 }
 0x17d   :  { %p4579_p7 = scmp.ne.s32.totalorder %s274_s15, %s4578_s16  ;;  %p4583_p8 = scmp.lt.s32.totalorder %s274_s15, %s274_s15 }
 0x17e   :  { %p4584_p9 = scmp.lt.s32.totalorder %s4582_s21, %s4578_s16 }
 0x180   :  { %p4585_p10 = por %p4584_p9, %p4583_p8 }
 0x182   :  { %p4586_p11 = pnand %p4585_p10, %p4579_p7 }
 0x184   :  { %4589 = shalt.err (!%p4586_p11)
}
 0x185   :  { %276 = dma.hbm_to_vmem [thread:$0]  %s5284_s11, 16, %s274_s15, [#allocation26]  }
 0x186   :  { %s4590_s1 = scalar_lea.hbm %s4856_s5, 32 }
 0x187   :  { %p4591_p12 = scmp.ne.s32.totalorder %s4856_s5, %s4590_s1  ;;  %p4594_p13 = scmp.lt.u32.totalorder %s4590_s1, %s4856_s5 }
 0x189   :  { %p4596_p0 = pnand %p4594_p13, %p4591_p12 }
 0x18b   :  { %4599 = shalt.err (!%p4596_p0)
}
 0x18c   :  { %s4600_s13 = scalar_lea.vmem %s296_s14, 32  ;;  %p4605_p2 = scmp.lt.s32.totalorder %s296_s14, %s296_s14 }
 0x18d   :  { %p4601_p1 = scmp.ne.s32.totalorder %s296_s14, %s4600_s13  ;;  %p4606_p3 = scmp.lt.s32.totalorder %s4600_s13, %s4600_s13 }
 0x18f   :  { %p4607_p4 = por %p4606_p3, %p4605_p2 }
 0x191   :  { %p4608_p5 = pnand %p4607_p4, %p4601_p1 }
 0x193   :  { %4611 = shalt.err (!%p4608_p5)
}
 0x194   :  { %298 = dma.hbm_to_vmem [thread:$0]  %s4856_s5, 32, %s296_s14, [#allocation29]  }
 0x195   :  { %s4713_s18 = smov [#allocation33]   ;;  %s4612_s8 = scalar_lea.hbm %s4866_s4, 16 }
 0x196   :  { %s317_s22 = sshll.u32 %s4713_s18, 4  ;;  %p4613_p6 = scmp.ne.s32.totalorder %s4866_s4, %s4612_s8  ;;  %s318_s22 = int_to_ptr.vmem [resolvable:$true] %s317_s22 }
 0x197   :  { %p4616_p7 = scmp.lt.u32.totalorder %s4612_s8, %s4866_s4 }
 0x199   :  { %p4618_p8 = pnand %p4616_p7, %p4613_p6 }
 0x19b   :  { %4621 = shalt.err (!%p4618_p8)
}
 0x19c   :  { %s4622_s23 = scalar_lea.vmem %s318_s22, 16  ;;  %s4626_s26 = scalar_lea.vmem %s318_s22, 32 }
 0x19d   :  { %p4623_p9 = scmp.ne.s32.totalorder %s318_s22, %s4622_s23  ;;  %p4627_p10 = scmp.lt.s32.totalorder %s318_s22, %s318_s22 }
 0x19e   :  { %p4628_p11 = scmp.lt.s32.totalorder %s4626_s26, %s4622_s23 }
 0x1a0   :  { %p4629_p12 = por %p4628_p11, %p4627_p10 }
 0x1a2   :  { %p4630_p13 = pnand %p4629_p12, %p4623_p9 }
 0x1a4   :  { %4633 = shalt.err (!%p4630_p13)
}
 0x1a5   :  { %320 = dma.hbm_to_vmem [thread:$0]  %s4866_s4, 16, %s318_s22, [#allocation32]  }
 0x1a6   :  { %4634 = dma.done.wait [#allocation3], 1024  }
 0x1a7   :  { %4635 = vsyncadd [#allocation3], 4294966272 }
 0x1a8   :  { %4636 = dma.done.wait [#allocation5], 144  }
 0x1a9   :  { %4637 = vsyncadd [#allocation5], 4294967152 }
 0x1aa   :  { %4638 = dma.done.wait [#allocation8], 96  }
 0x1ab   :  { %4639 = vsyncadd [#allocation8], 4294967200 }
 0x1ac   :  { %4640 = dma.done.wait [#allocation11], 528  }
 0x1ad   :  { %4641 = vsyncadd [#allocation11], 4294966768 }
 0x1ae   :  { %4642 = dma.done.wait [#allocation14], 528  }
 0x1af   :  { %4643 = vsyncadd [#allocation14], 4294966768 }
 0x1b0   :  { %4644 = dma.done.wait [#allocation17], 32  }
 0x1b1   :  { %4645 = vsyncadd [#allocation17], 4294967264 }
 0x1b2   :  { %4646 = dma.done.wait [#allocation20], 1040  }
 0x1b3   :  { %4647 = vsyncadd [#allocation20], 4294966256 }
 0x1b4   :  { %4648 = dma.done.wait [#allocation23], 720  }
 0x1b5   :  { %4649 = vsyncadd [#allocation23], 4294966576 }
 0x1b6   :  { %4650 = dma.done.wait [#allocation26], 32  }
 0x1b7   :  { %4651 = vsyncadd [#allocation26], 4294967264 }
 0x1b8   :  { %4652 = dma.done.wait [#allocation29], 2080  }
 0x1b9   :  { %4653 = vsyncadd [#allocation29], 4294965216 }
 0x1ba   :  { %4654 = dma.done.wait [#allocation32], 2064  }
 0x1bb   :  { %4655 = vsyncadd [#allocation32], 4294965232  ;;  %s5285_s5 = sld [smem:[#allocation45_spill]]  ;;  %v393_v8 = vld [vmem:[#allocation2] sm:$0xff]  ;;  %vm395_vm0 = vcmask 523264   ;;  %v480_v9 = vld [vmem:[#allocation2 + $0x10] sm:$0xff] }
 0x1bc   :  { %3646 = vmatprep.mubr.msk.f32.mxu0 %vm395_vm0, %v393_v8  ;;  %3665 = vmatprep.mubr.msk.f32.mxu1 %vm395_vm0, %v480_v9  ;;  %v394_v14 = vld [vmem:[#allocation2 + $0x8] sm:$0xff]  ;;  %v481_v15 = vld [vmem:[#allocation2 + $0x18] sm:$0xff]  ;;  %v4714_v16 = vmov 0.0   ;;  %v565_v17 = vld [vmem:[#allocation4 + $0x2] sm:$0x3]  ;;  %vm570_vm1 = vcmask 1041408  }
 0x1bd   :  { %v572_v18 = vsel %vm570_vm1, %v565_v17, 0  ;;  %v478_v19 = vld [vmem:[#allocation4] sm:$0x3]  ;;  %vm4715_vm2 = vmmov 0   ;;  %vm566_vm3 = vcmask 31744   ;;  %v664_v28 = vld [vmem:[#allocation2 + $0x28] sm:$0xff] }
 0x1be   :  { %v619_v20 = vsel %vm570_vm1, %v478_v19, 0  ;;  %v663_v27 = vld [vmem:[#allocation2 + $0x20] sm:$0xff]  ;;  %v799_v44 = vld [vmem:[#allocation2 + $0x30] sm:$0xff]  ;;  %s5286_s4 = sld [smem:[#allocation46_spill]]  ;;  %v800_v45 = vld [vmem:[#allocation2 + $0x38] sm:$0xff]  ;;  %vm945_vm4 = vcmask 130048  }
 0x1bf   :  { %v748_v29 = vld [vmem:[#allocation4 + $0x4] sm:$0x3]  ;;  %v884_v46 = vld [vmem:[#allocation4 + $0x6] sm:$0x3]  ;;  %v3318_v62 = vld [vmem:[#allocation6] ss:$0 sm:$0xff] }
 0x1c0   :  { %v753_v30 = vsel %vm570_vm1, %v748_v29, 0  ;;  %v889_v47 = vsel %vm570_vm1, %v884_v46, 0  ;;  %s5287_s3 = sld [smem:[#allocation47_spill]]  ;;  %v4047_v17 = vld [vmem:[#allocation10 + $0x18] sm:$0xff]   ;;  %s5288_s20 = sld [smem:[#allocation48_spill]]  ;;  %vm2156_vm5 = vcmask 64512  }
 0x1c1   :  { %v385_v0 = vld [vmem:[%s5285_s5] sm:$0xff]  ;;  %v386_v1 = vld [vmem:[%s5285_s5 + $0x8] sm:$0xff]  ;;  %v387_v2 = vld [vmem:[%s5285_s5 + $0x10] sm:$0xff]  ;;  %s5289_s2 = sld [smem:[#allocation50_spill]]  ;;  %s5290_s24 = sld [smem:[#allocation53_spill]] }
 0x1c2   :  { %v5010_v3 = vpack.c.bf16 %v386_v1, %v385_v0  ;;  %v388_v4 = vld [vmem:[%s5285_s5 + $0x18] sm:$0xff]  ;;  %v389_v6 = vld [vmem:[%s5285_s5 + $0x20] sm:$0xff]  ;;  %v390_v7 = vld [vmem:[%s5285_s5 + $0x28] sm:$0xff]  ;;  %s5291_s0 = sld [smem:[#allocation55_spill]]  ;;  %s5292_s25 = sld [smem:[#allocation54_spill]] }
 0x1c3   :  { %v5013_v5 = vpack.c.bf16 %v388_v4, %v387_v2  ;;  %v391_v10 = vld [vmem:[%s5285_s5 + $0x30] sm:$0xff]  ;;  %v392_v11 = vld [vmem:[%s5285_s5 + $0x38] sm:$0xff]  ;;  %v5025_v12 = vpack.c.bf16 %v390_v7, %v389_v6 }
 0x1c4   :  { %3893 = vmatprep.subr.bf16.mxu0 %v5010_v3  ;;  %3909 = vmatprep.subr.bf16.mxu1 %v5010_v3  ;;  %v5033_v13 = vpack.c.bf16 %v392_v11, %v391_v10  ;;  %v943_v57 = vld [vmem:[%s5286_s4] sm:$0xff]  ;;  %v3322_v58 = vld [vmem:[%s5286_s4 + $0x10] sm:$0xff]  ;;  %v3323_v6 = vld [vmem:[%s5286_s4 + $0x18] sm:$0xff] }
 0x1c5   :  { %3895 = vmatpush3.bf16.msra.mxu0 %v5010_v3  ;;  %3911 = vmatpush3.bf16.msra.mxu1 %v5010_v3  ;;  %v3327_v7 = vld [vmem:[%s5286_s4 + $0x20] sm:$0xff]  ;;  %v3332_v8 = vld [vmem:[%s5286_s4 + $0x30] sm:$0xff]  ;;  %v3328_v9 = vld [vmem:[%s5286_s4 + $0x28] sm:$0xff] }
 0x1c6   :  { %3897 = vmatprep.subr.bf16.mxu0 %v5013_v5  ;;  %3913 = vmatprep.subr.bf16.mxu1 %v5013_v5  ;;  %v3333_v10 = vld [vmem:[%s5286_s4 + $0x38] sm:$0xff]  ;;  %v3337_v11 = vld [vmem:[%s5286_s4 + $0x40] sm:$0xff]  ;;  %v4049_v19 = vld [vmem:[%s5287_s3 + $0x8] sm:$0xff]  }
 0x1c9   :  { %3899 = vmatpush3.bf16.msra.mxu0 %v5013_v5  ;;  %3915 = vmatpush3.bf16.msra.mxu1 %v5013_v5 }
 0x1ca   :  { %3901 = vmatprep.subr.bf16.mxu0 %v5025_v12  ;;  %3917 = vmatprep.subr.bf16.mxu1 %v5025_v12 }
 0x1cd   :  { %3903 = vmatpush3.bf16.msra.mxu0 %v5025_v12  ;;  %3919 = vmatpush3.bf16.msra.mxu1 %v5025_v12 }
 0x1ce   :  { %3905 = vmatprep.subr.bf16.mxu0 %v5033_v13  ;;  %3921 = vmatprep.subr.bf16.mxu1 %v5033_v13 }
 0x1d1   :  { %3907 = vmatpush3.bf16.msra.mxu0 %v5033_v13  ;;  %3923 = vmatpush3.bf16.msra.mxu1 %v5033_v13 }
 0x1d2   :  { %3668 = vmatprep.subr.bf16.mxu0 %v4714_v16  ;;  %3674 = vmatprep.subr.bf16.mxu1 %v4714_v16 }
 0x1d4   :  { %3647 = vmatmul.mubr.msk.f32.vlgmr.msra.gmra.mrb[0].mxu0 %vm395_vm0, %v394_v14  ;;  %3666 = vmatmul.mubr.msk.f32.vlgmr.msra.gmra.mrb[0].mxu1 %vm395_vm0, %v481_v15  ;;  %v4045_v14 = vld [vmem:[#allocation10 + $0x8] sm:$0xff]   ;;  %v4046_v15 = vld [vmem:[#allocation10 + $0x10] sm:$0xff]  }
 0x1d5   :  { %3669 = vmatpush3.bf16.msra.mxu0 %v572_v18  ;;  %3675 = vmatpush3.bf16.msra.mxu1 %v619_v20  ;;  %v4048_v18 = vld [vmem:[%s5287_s3] sm:$0xff]   ;;  %v3321_v20 = vld [vmem:[#allocation7] ss:$0 sm:$0xff] }
 0x1d6   :  { %3925 = vmatprep.subr.bf16.mxu0 %v5010_v3  ;;  %3699 = vmatprep.subr.bf16.mxu1 %v4714_v16 }
 0x1d7   :  { %3670 = vmatprep.mubr.msk.bf16.mxu0 %vm4715_vm2, %v4714_v16  ;;  %3676 = vmatprep.mubr.msk.bf16.mxu1 %vm4715_vm2, %v4714_v16 }
 0x2a7   :  { %v3648_v21 = vpop.f32.mrb[0].mxu0  ;;  %v3667_v22 = vpop.f32.mrb[0].mxu1 }
 0x2a8   :  { %v468_v23 = vpop.f32.mrb[1].mxu0  ;;  %v554_v24 = vpop.f32.mrb[1].mxu1 }
 0x2a9   :  { %v477_v25 = vpack.c.bf16 %v3648_v21, %v468_v23  ;;  %v563_v26 = vpack.c.bf16 %v3667_v22, %v554_v24  ;;  %v3326_v21 = vld [vmem:[#allocation7 + $0x1] ss:$0 sm:$0xff] }
 0x2ab   :  { %3671 = vmatmul.mubr.msk.bf16.vlgmr.msra.gmra.mrb[4].mxu0 %vm566_vm3, %v563_v26  ;;  %3677 = vmatmul.mubr.msk.bf16.vlgmr.msra.gmra.mrb[4].mxu1 %vm566_vm3, %v477_v25 }
 0x2ac   :  { %3927 = vmatpush3.bf16.msra.mxu0 %v5010_v3  ;;  %3696 = vmatprep.mubr.msk.f32.mxu0 %vm395_vm0, %v663_v27 }
 0x2ad   :  { %3929 = vmatprep.subr.bf16.mxu0 %v5013_v5  ;;  %3701 = vmatprep.mubr.msk.bf16.mxu1 %vm4715_vm2, %v4714_v16 }
 0x2ae   :  { %3700 = vmatpush3.bf16.msra.mxu1 %v753_v30  ;;  %v3331_v30 = vld [vmem:[#allocation7 + $0x2] ss:$0 sm:$0xff] }
 0x2af   :  { %3941 = vmatprep.subr.bf16.mxu1 %v5010_v3 }
 0x2b0   :  { %3931 = vmatpush3.bf16.msra.mxu0 %v5013_v5 }
 0x2b1   :  { %3933 = vmatprep.subr.bf16.mxu0 %v5025_v12 }
 0x2b4   :  { %3935 = vmatpush3.bf16.msra.mxu0 %v5025_v12 }
 0x2b5   :  { %3937 = vmatprep.subr.bf16.mxu0 %v5033_v13 }
 0x2b8   :  { %3939 = vmatpush3.bf16.msra.mxu0 %v5033_v13 }
 0x2b9   :  { %3724 = vmatprep.subr.bf16.mxu0 %v4714_v16 }
 0x2bb   :  { %3697 = vmatmul.mubr.msk.f32.vlgmr.msra.gmra.mrb[2].mxu0 %vm395_vm0, %v664_v28 }
 0x2bc   :  { %3726 = vmatprep.mubr.msk.bf16.mxu0 %vm4715_vm2, %v4714_v16  ;;  %3725 = vmatpush3.bf16.msra.mxu0 %v889_v47 }
 0x37e   :  { %v608_v31 = vpop.f32.mrb[4].mxu0  ;;  %v655_v32 = vpop.f32.mrb[4].mxu1 }
 0x37f   :  { %v656_v33 = vadd.f32 %v655_v32, %v608_v31  ;;  %v3672_v34 = vpop.f32.mrb[5].mxu0  ;;  %v3678_v35 = vpop.f32.mrb[5].mxu1  ;;  %v3336_v31 = vld [vmem:[#allocation7 + $0x3] ss:$0 sm:$0xff] }
 0x380   :  { %v611_v36 = vpop.f32.mrb[6].mxu0  ;;  %v658_v37 = vpop.f32.mrb[6].mxu1 }
 0x381   :  { %v659_v38 = vadd.f32 %v658_v37, %v611_v36  ;;  %v3673_v39 = vpop.f32.mrb[7].mxu0  ;;  %v3679_v40 = vpop.f32.mrb[7].mxu1 }
 0x38e   :  { %v3698_v41 = vpop.f32.mrb[2].mxu0 }
 0x38f   :  { %v737_v42 = vpop.f32.mrb[3].mxu0 }
 0x390   :  { %v746_v43 = vpack.c.bf16 %v3698_v41, %v737_v42  ;;  %v3341_v42 = vld [vmem:[#allocation7 + $0x4] ss:$0 sm:$0xff] }
 0x392   :  { %3702 = vmatmul.mubr.msk.bf16.vlgmr.msra.gmra.mrb[8].mxu1 %vm566_vm3, %v746_v43 }
 0x393   :  { %3943 = vmatpush3.bf16.msra.mxu1 %v5010_v3  ;;  %3721 = vmatprep.mubr.msk.f32.mxu1 %vm395_vm0, %v799_v44 }
 0x394   :  { %3945 = vmatprep.subr.bf16.mxu1 %v5013_v5 }
 0x397   :  { %3947 = vmatpush3.bf16.msra.mxu1 %v5013_v5  ;;  %v944_v5 = vld [vmem:[%s5286_s4 + $0x8] sm:$0xff] }
 0x398   :  { %3949 = vmatprep.subr.bf16.mxu1 %v5025_v12 }
 0x39b   :  { %3951 = vmatpush3.bf16.msra.mxu1 %v5025_v12  ;;  %v3338_v12 = vld [vmem:[%s5286_s4 + $0x48] sm:$0xff] }
 0x39c   :  { %3953 = vmatprep.subr.bf16.mxu1 %v5033_v13 }
 0x39f   :  { %3955 = vmatpush3.bf16.msra.mxu1 %v5033_v13  ;;  %v4044_v13 = vld [vmem:[#allocation10] sm:$0xff]  }
 0x3a2   :  { %3722 = vmatmul.mubr.msk.f32.vlgmr.msra.gmra.mrb[2].mxu1 %vm395_vm0, %v800_v45 }
 0x3a3   :  { %3741 = vmatprep.mubr.msk.f32.mxu1 %vm945_vm4, %v3322_v58  ;;  %v4051_v58 = vld [vmem:[%s5287_s3 + $0x18] sm:$0xff]  }
 0x465   :  { %v789_v48 = vpop.f32.mrb[8].mxu1 }
 0x466   :  { %v796_v49 = vadd.f32 %v789_v48, %v656_v33  ;;  %v3703_v50 = vpop.f32.mrb[9].mxu1 }
 0x467   :  { %v792_v51 = vpop.f32.mrb[10].mxu1  ;;  %v3342_v50 = vld [vmem:[#allocation9] ss:$0 sm:$0xff] }
 0x468   :  { %v797_v52 = vadd.f32 %v792_v51, %v659_v38  ;;  %v3704_v53 = vpop.f32.mrb[11].mxu1 }
 0x475   :  { %v3723_v54 = vpop.f32.mrb[2].mxu1 }
 0x476   :  { %v873_v55 = vpop.f32.mrb[3].mxu1 }
 0x477   :  { %v882_v56 = vpack.c.bf16 %v3723_v54, %v873_v55 }
 0x479   :  { %3727 = vmatmul.mubr.msk.bf16.vlgmr.msra.gmra.mrb[8].mxu0 %vm566_vm3, %v882_v56 }
 0x47a   :  { %3734 = vmatprep.mubr.msk.f32.mxu0 %vm945_vm4, %v943_v57  ;;  %v4050_v57 = vld [vmem:[%s5287_s3 + $0x10] sm:$0xff]  }
 0x54c   :  { %v925_v59 = vpop.f32.mrb[8].mxu0 }
 0x54d   :  { %v932_v60 = vadd.f32 %v925_v59, %v796_v49  ;;  %v3728_v61 = vpop.f32.mrb[9].mxu0  ;;  %v4052_v59 = vld [vmem:[%s5287_s3 + $0x20] sm:$0xff]  }
 0x54e   :  { %v928_v63 = vpop.f32.mrb[10].mxu0  ;;  %v4054_v61 = vld [vmem:[%s5287_s3 + $0x30] sm:$0xff]  }
 0x54f   :  { %v933_v0 = vadd.f32 %v928_v63, %v797_v52  ;;  %v3729_v1 = vpop.f32.mrb[11].mxu0  ;;  %v5087_v2 = vadd.f32 %v3318_v62, %v932_v60  ;;  %v4053_v60 = vld [vmem:[%s5287_s3 + $0x28] sm:$0xff]   ;;  %v4056_v63 = vld [vmem:[#allocation15] sm:$0xff]  }
 0x550   :  { %v3343_v1 = vld [vmem:[#allocation12] ss:$0 sm:$0xff] }
 0x551   :  { %v5089_v3 = vadd.f32 %v3318_v62, %v933_v0  ;;  %v4055_v62 = vld [vmem:[%s5287_s3 + $0x38] sm:$0xff]  }
 0x552   :  { %v4057_v0 = vld [vmem:[#allocation15 + $0x8] sm:$0xff]  }
 0x553   :  { %v3956_v4 = vpack.c.bf16 %v5089_v3, %v5087_v2 }
 0x555   :  { %3957 = vmatprep.subr.bf16.mxu0 %v3956_v4  ;;  %3961 = vmatprep.subr.bf16.mxu1 %v3956_v4 }
 0x556   :  { %3959 = vmatpush3.bf16.msra.mxu0 %v3956_v4  ;;  %3963 = vmatpush3.bf16.msra.mxu1 %v3956_v4 }
 0x557   :  { %3965 = vmatprep.subr.bf16.mxu0 %v3956_v4  ;;  %3969 = vmatprep.subr.bf16.mxu1 %v3956_v4 }
 0x559   :  { %3735 = vmatmul.mubr.msk.f32.vlgmr.msra.gmra.mrb[12].mxu0 %vm945_vm4, %v944_v5  ;;  %3742 = vmatmul.mubr.msk.f32.vlgmr.msra.gmra.mrb[12].mxu1 %vm945_vm4, %v3323_v6 }
 0x55a   :  { %3967 = vmatpush3.bf16.msra.mxu0 %v3956_v4  ;;  %3971 = vmatpush3.bf16.msra.mxu1 %v3956_v4 }
 0x55b   :  { %3973 = vmatprep.subr.bf16.mxu0 %v3956_v4  ;;  %3748 = vmatprep.mubr.msk.f32.mxu0 %vm945_vm4, %v3327_v7 }
 0x55c   :  { %3755 = vmatprep.mubr.msk.f32.mxu1 %vm945_vm4, %v3332_v8  ;;  %3765 = vmatprep.subr.bf16.mxu1 %v4714_v16 }
 0x55d   :  { %3749 = vmatmul.mubr.msk.f32.vlgmr.msra.gmra.mrb[14].mxu0 %vm945_vm4, %v3328_v9  ;;  %3756 = vmatmul.mubr.msk.f32.vlgmr.msra.gmra.mrb[14].mxu1 %vm945_vm4, %v3333_v10 }
 0x55e   :  { %3975 = vmatpush3.bf16.msra.mxu0 %v3956_v4  ;;  %3762 = vmatprep.mubr.msk.f32.mxu0 %vm945_vm4, %v3337_v11 }
 0x55f   :  { %3773 = vmatprep.mubr.msk.bf16.mxu1 %vm4715_vm2, %v4714_v16  ;;  %3777 = vmatprep.subr.bf16.mxu0 %v4714_v16 }
 0x560   :  { %3766 = vmatpush3.bf16.msra.mxu1 %v4044_v13 }
 0x561   :  { %3763 = vmatmul.mubr.msk.f32.vlgmr.msra.gmra.mrb[16].mxu0 %vm945_vm4, %v3338_v12  ;;  %3767 = vmatprep.subr.bf16.mxu1 %v4714_v16 }
 0x562   :  { %3793 = vmatprep.mubr.msk.bf16.mxu0 %vm4715_vm2, %v4714_v16  ;;  %3778 = vmatpush3.bf16.msra.mxu0 %v4048_v18 }
 0x563   :  { %3779 = vmatprep.subr.bf16.mxu0 %v4714_v16 }
 0x564   :  { %3768 = vmatpush3.bf16.msra.mxu1 %v4045_v14 }
 0x565   :  { %3769 = vmatprep.subr.bf16.mxu1 %v4714_v16 }
 0x566   :  { %3780 = vmatpush3.bf16.msra.mxu0 %v4049_v19 }
 0x567   :  { %3781 = vmatprep.subr.bf16.mxu0 %v4714_v16 }
 0x568   :  { %3770 = vmatpush3.bf16.msra.mxu1 %v4046_v15 }
 0x569   :  { %3771 = vmatprep.subr.bf16.mxu1 %v4714_v16 }
 0x56a   :  { %3782 = vmatpush3.bf16.msra.mxu0 %v4050_v57 }
 0x56b   :  { %3783 = vmatprep.subr.bf16.mxu0 %v4714_v16 }
 0x56c   :  { %3772 = vmatpush3.bf16.msra.mxu1 %v4047_v17 }
 0x56d   :  { %3797 = vmatprep.subr.bf16.mxu1 %v4714_v16 }
 0x56e   :  { %3784 = vmatpush3.bf16.msra.mxu0 %v4051_v58  ;;  %v4716_v58 = vmov 0.0|0.0  }
 0x56f   :  { %3785 = vmatprep.subr.bf16.mxu0 %v4714_v16 }
 0x572   :  { %3786 = vmatpush3.bf16.msra.mxu0 %v4052_v59  ;;  %v3364_v59 = vld [vmem:[#allocation18] ss:$0 sm:$0xff] }
 0x573   :  { %3787 = vmatprep.subr.bf16.mxu0 %v4714_v16 }
 0x576   :  { %3788 = vmatpush3.bf16.msra.mxu0 %v4053_v60 }
 0x577   :  { %3789 = vmatprep.subr.bf16.mxu0 %v4714_v16 }
 0x57a   :  { %3790 = vmatpush3.bf16.msra.mxu0 %v4054_v61 }
 0x57b   :  { %3791 = vmatprep.subr.bf16.mxu0 %v4714_v16 }
 0x57e   :  { %3792 = vmatpush3.bf16.msra.mxu0 %v4055_v62 }
 0x57f   :  { %3976 = vmatprep.subr.bf16.mxu0 %v4716_v58 }
 0x62c   :  { %v3736_v22 = vpop.f32.mrb[12].mxu0  ;;  %v3743_v23 = vpop.f32.mrb[12].mxu1 }
 0x62d   :  { %v1035_v24 = vmul.f32 %v3736_v22, %v3321_v20  ;;  %v1129_v25 = vmul.f32 %v3743_v23, %v3326_v21  ;;  %v1018_v26 = vpop.f32.mrb[13].mxu0  ;;  %v1111_v27 = vpop.f32.mrb[13].mxu1  ;;  %v4058_v22 = vld [vmem:[#allocation15 + $0x10] sm:$0xff]   ;;  %v4059_v23 = vld [vmem:[#allocation15 + $0x18] sm:$0xff]  }
 0x62e   :  { %v1034_v28 = vmul.f32 %v3321_v20, %v1018_v26  ;;  %v1128_v29 = vmul.f32 %v3326_v21, %v1111_v27 }
 0x62f   :  { %v1131_v32 = vadd.f32 %v1129_v25, %v1035_v24  ;;  %v3349_v24 = vld [vmem:[#allocation13] ss:$0 sm:$0xff] }
 0x630   :  { %v1130_v33 = vadd.f32 %v1128_v29, %v1034_v28  ;;  %v3750_v34 = vpop.f32.mrb[14].mxu0  ;;  %v3757_v35 = vpop.f32.mrb[14].mxu1 }
 0x631   :  { %v1225_v36 = vmul.f32 %v3750_v34, %v3331_v30  ;;  %v1207_v37 = vpop.f32.mrb[15].mxu0  ;;  %v1321_v38 = vmul.f32 %v3757_v35, %v3336_v31  ;;  %v1303_v39 = vpop.f32.mrb[15].mxu1  ;;  %v4062_v34 = vld [vmem:[%s5288_s20 + $0x10] sm:$0xff]   ;;  %v4063_v35 = vld [vmem:[%s5288_s20 + $0x18] sm:$0xff]  }
 0x632   :  { %v1224_v40 = vmul.f32 %v3331_v30, %v1207_v37  ;;  %v1320_v41 = vmul.f32 %v3336_v31, %v1303_v39  ;;  %v4060_v31 = vld [vmem:[%s5288_s20] sm:$0xff]   ;;  %v4065_v37 = vld [vmem:[%s5288_s20 + $0x28] sm:$0xff]   ;;  %v4067_v39 = vld [vmem:[%s5288_s20 + $0x38] sm:$0xff]  }
 0x633   :  { %v1227_v43 = vadd.f32 %v1225_v36, %v1131_v32  ;;  %v4064_v36 = vld [vmem:[%s5288_s20 + $0x20] sm:$0xff]  }
 0x634   :  { %v1226_v44 = vadd.f32 %v1224_v40, %v1130_v33  ;;  %v3764_v45 = vpop.f32.mrb[16].mxu0  ;;  %v4061_v33 = vld [vmem:[%s5288_s20 + $0x8] sm:$0xff]   ;;  %v3358_v40 = vld [vmem:[#allocation16] ss:$0 sm:$0xff] }
 0x635   :  { %v1323_v46 = vadd.f32 %v1321_v38, %v1227_v43  ;;  %v1417_v47 = vmul.f32 %v3764_v45, %v3341_v42  ;;  %v1399_v48 = vpop.f32.mrb[17].mxu0  ;;  %v4066_v38 = vld [vmem:[%s5288_s20 + $0x30] sm:$0xff]  }
 0x636   :  { %v1322_v49 = vadd.f32 %v1320_v41, %v1226_v44  ;;  %v1416_v51 = vmul.f32 %v3341_v42, %v1399_v48 }
 0x637   :  { %v1419_v52 = vadd.f32 %v1417_v47, %v1323_v46 }
 0x638   :  { %v1418_v53 = vadd.f32 %v1416_v51, %v1322_v49 }
 0x639   :  { %v1428_v54 = vadd.f32 %v3342_v50, %v1419_v52 }
 0x63a   :  { %v1427_v55 = vadd.f32 %v3342_v50, %v1418_v53 }
 0x63c   :  { %v1429_v56 = vpack.c.bf16 %v1428_v54, %v1427_v55 }
 0x63e   :  { %3774 = vmatmul.mubr.msk.bf16.vlgmr.msra.gmra.mrb[16].mxu1 %vm395_vm0, %v1429_v56 }
 0x63f   :  { %3805 = vmatprep.mubr.msk.bf16.mxu1 %vm4715_vm2, %v4714_v16  ;;  %3798 = vmatpush3.bf16.msra.mxu1 %v4056_v63 }
 0x640   :  { %3799 = vmatprep.subr.bf16.mxu1 %v4714_v16 }
 0x643   :  { %3800 = vmatpush3.bf16.msra.mxu1 %v4057_v0 }
 0x644   :  { %3801 = vmatprep.subr.bf16.mxu1 %v4714_v16 }
 0x647   :  { %3802 = vmatpush3.bf16.msra.mxu1 %v4058_v22 }
 0x648   :  { %3803 = vmatprep.subr.bf16.mxu1 %v4714_v16 }
 0x64b   :  { %3804 = vmatpush3.bf16.msra.mxu1 %v4059_v23 }
 0x64c   :  { %3809 = vmatprep.subr.bf16.mxu1 %v4714_v16 }
 0x711   :  { %v1506_v4 = vpop.f32.mrb[16].mxu1 }
 0x712   :  { %v1507_v5 = vadd.f32 %v3343_v1, %v1506_v4  ;;  %v3775_v6 = vpop.f32.mrb[17].mxu1 }
 0x713   :  { %v1509_v7 = vpop.f32.mrb[18].mxu1 }
 0x714   :  { %v1515_v8 = vmul.f32 0.70710677, %v1507_v5  ;;  %v1510_v9 = vadd.f32 %v3343_v1, %v1509_v7  ;;  %v3776_v10 = vpop.f32.mrb[19].mxu1  ;;  %v1513_v15 = vmul.f32 0.5, %v1507_v5  ;;  %v1845_v7 = vld [vmem:[%s5289_s2] sm:$0xff] }
 0x715   :  { %v4071_v10 = vld [vmem:[#allocation19 + $0x38] sm:$0xff]  }
 0x716   :  { %4156 = verf.f32 %v1515_v8  ;;  %v1516_v11 = vmul.f32 0.70710677, %v1510_v9  ;;  %v1514_v17 = vmul.f32 0.5, %v1510_v9  ;;  %v3374_v8 = vld [vmem:[%s5289_s2 + $0x8] sm:$0xff]  ;;  %v4068_v9 = vld [vmem:[#allocation19 + $0x20] sm:$0xff]  }
 0x718   :  { %4158 = verf.f32 %v1516_v11 }
 0x720   :  { %v4157_v12 = vpop.eup %4156 }
 0x721   :  { %v1519_v13 = vadd.f32 1.0, %v4157_v12 }
 0x722   :  { %v4159_v14 = vpop.eup %4158 }
 0x723   :  { %v1520_v18 = vadd.f32 1.0, %v4159_v14  ;;  %v1521_v19 = vmul.f32 %v1519_v13, %v1513_v15  ;;  %v4072_v14 = vld [vmem:[#allocation19] sm:$0xff]  }
 0x725   :  { %v1522_v20 = vmul.f32 %v1520_v18, %v1514_v17  ;;  %v4073_v18 = vld [vmem:[#allocation19 + $0x8] sm:$0xff]  }
 0x727   :  { %v1523_v21 = vpack.c.bf16 %v1522_v20, %v1521_v19  ;;  %v4074_v19 = vld [vmem:[#allocation19 + $0x10] sm:$0xff]   ;;  %v4075_v20 = vld [vmem:[#allocation19 + $0x18] sm:$0xff]  }
 0x729   :  { %3794 = vmatmul.mubr.bf16.vlgmr.msra.gmra.mrb[20].mxu0 %v1523_v21 }
 0x72a   :  { %3833 = vmatprep.mubr.msk.f32.mxu0 %vm4715_vm2, %v4714_v16 }
 0x7fc   :  { %v1629_v25 = vpop.f32.mrb[20].mxu0 }
 0x7fd   :  { %v3795_v26 = vpop.f32.mrb[21].mxu0  ;;  %v1630_v28 = vadd.f32 %v3349_v24, %v1629_v25 }
 0x7fe   :  { %v1632_v27 = vpop.f32.mrb[22].mxu0 }
 0x7ff   :  { %v1633_v29 = vadd.f32 %v3349_v24, %v1632_v27  ;;  %v3796_v30 = vpop.f32.mrb[23].mxu0  ;;  %v3386_v27 = vld [vmem:[#allocation21] ss:$0 sm:$0xff] }
 0x801   :  { %v1636_v32 = vpack.c.bf16 %v1633_v29, %v1630_v28 }
 0x803   :  { %3806 = vmatmul.mubr.msk.bf16.vlgmr.msra.gmra.mrb[20].mxu1 %vm395_vm0, %v1636_v32 }
 0x804   :  { %3810 = vmatpush3.bf16.msra.mxu1 %v4060_v31  ;;  %3825 = vmatprep.mubr.msk.bf16.mxu1 %vm4715_vm2, %v4714_v16 }
 0x805   :  { %3811 = vmatprep.subr.bf16.mxu1 %v4714_v16 }
 0x808   :  { %3812 = vmatpush3.bf16.msra.mxu1 %v4061_v33  ;;  %v2155_v33 = vld [vmem:[#allocation22] sm:$0xff] }
 0x809   :  { %3813 = vmatprep.subr.bf16.mxu1 %v4714_v16 }
 0x80c   :  { %3814 = vmatpush3.bf16.msra.mxu1 %v4062_v34  ;;  %v2494_v34 = vld [vmem:[#allocation22 + $0x20] sm:$0xff] }
 0x80d   :  { %3815 = vmatprep.subr.bf16.mxu1 %v4714_v16 }
 0x810   :  { %3816 = vmatpush3.bf16.msra.mxu1 %v4063_v35  ;;  %v2239_v35 = vld [vmem:[#allocation22 + $0x8] sm:$0xff] }
 0x811   :  { %3817 = vmatprep.subr.bf16.mxu1 %v4714_v16 }
 0x814   :  { %3818 = vmatpush3.bf16.msra.mxu1 %v4064_v36  ;;  %v2324_v36 = vld [vmem:[#allocation22 + $0x10] sm:$0xff] }
 0x815   :  { %3819 = vmatprep.subr.bf16.mxu1 %v4714_v16 }
 0x818   :  { %3820 = vmatpush3.bf16.msra.mxu1 %v4065_v37  ;;  %v4078_v37 = vld [vmem:[%s5290_s24 + $0x4] ss:$8 sps:$4 sm:$0xff]  }
 0x819   :  { %3821 = vmatprep.subr.bf16.mxu1 %v4714_v16 }
 0x81c   :  { %3822 = vmatpush3.bf16.msra.mxu1 %v4066_v38  ;;  %v2409_v38 = vld [vmem:[#allocation22 + $0x18] sm:$0xff] }
 0x81d   :  { %3823 = vmatprep.subr.bf16.mxu1 %v4714_v16 }
 0x820   :  { %3824 = vmatpush3.bf16.msra.mxu1 %v4067_v39  ;;  %v4076_v39 = vld [vmem:[%s5290_s24] ss:$8 sps:$4 sm:$0xff]  }
 0x821   :  { %3867 = vmatprep.subr.mxu1 %v4714_v16 }
 0x8d6   :  { %v1713_v41 = vpop.f32.mrb[20].mxu1 }
 0x8d7   :  { %v1714_v42 = vadd.f32 %v3358_v40, %v1713_v41  ;;  %v3807_v43 = vpop.f32.mrb[21].mxu1  ;;  %v4079_v41 = vld [vmem:[%s5290_s24 + $0x10] ss:$8 sps:$4 sm:$0xff]  }
 0x8d8   :  { %v1716_v44 = vpop.f32.mrb[22].mxu1  ;;  %v4082_v43 = vld [vmem:[%s5290_s24 + $0x20] ss:$8 sps:$4 sm:$0xff]  }
 0x8d9   :  { %v1722_v45 = vmul.f32 0.70710677, %v1714_v42  ;;  %v1717_v46 = vadd.f32 %v3358_v40, %v1716_v44  ;;  %v3808_v47 = vpop.f32.mrb[23].mxu1  ;;  %v1720_v52 = vmul.f32 0.5, %v1714_v42  ;;  %v4081_v40 = vld [vmem:[%s5290_s24 + $0x14] ss:$8 sps:$4 sm:$0xff]  }
 0x8da   :  { %v4084_v42 = vld [vmem:[%s5290_s24 + $0x24] ss:$8 sps:$4 sm:$0xff]   ;;  %v4085_v44 = vld [vmem:[%s5290_s24 + $0x30] ss:$8 sps:$4 sm:$0xff]   ;;  %v4093_v47 = vld [vmem:[%s5290_s24 + $0x54] ss:$8 sps:$4 sm:$0xff]  }
 0x8db   :  { %4160 = verf.f32 %v1722_v45  ;;  %v1723_v48 = vmul.f32 0.70710677, %v1717_v46  ;;  %v1721_v53 = vmul.f32 0.5, %v1717_v46  ;;  %v4090_v45 = vld [vmem:[%s5290_s24 + $0x44] ss:$8 sps:$4 sm:$0xff]  }
 0x8dc   :  { %v4088_v46 = vld [vmem:[%s5290_s24 + $0x40] ss:$8 sps:$4 sm:$0xff]  }
 0x8dd   :  { %4162 = verf.f32 %v1723_v48  ;;  %v4091_v48 = vld [vmem:[%s5290_s24 + $0x50] ss:$8 sps:$4 sm:$0xff]  }
 0x8e5   :  { %v4161_v49 = vpop.eup %4160 }
 0x8e6   :  { %v1726_v50 = vadd.f32 1.0, %v4161_v49  ;;  %v4096_v49 = vld [vmem:[%s5290_s24 + $0x64] ss:$8 sps:$4 sm:$0xff]  }
 0x8e7   :  { %v4163_v51 = vpop.eup %4162 }
 0x8e8   :  { %v1727_v54 = vadd.f32 1.0, %v4163_v51  ;;  %v1728_v55 = vmul.f32 %v1726_v50, %v1720_v52  ;;  %v4094_v50 = vld [vmem:[%s5290_s24 + $0x60] ss:$8 sps:$4 sm:$0xff]   ;;  %v4099_v51 = vld [vmem:[%s5290_s24 + $0x74] ss:$8 sps:$4 sm:$0xff]  }
 0x8e9   :  { %v4097_v52 = vld [vmem:[%s5290_s24 + $0x70] ss:$8 sps:$4 sm:$0xff]  }
 0x8ea   :  { %v1729_v56 = vmul.f32 %v1727_v54, %v1721_v53  ;;  %v4717_v53 = vmov 0   ;;  %v4100_v54 = vld [vmem:[%s5291_s0 + $0x40] sm:$0xff]  }
 0x8ec   :  { %v1730_v57 = vpack.c.bf16 %v1729_v56, %v1728_v55  ;;  %v4101_v55 = vld [vmem:[%s5291_s0] sm:$0xff]   ;;  %v4102_v56 = vld [vmem:[%s5291_s0 + $0x48] sm:$0xff]  }
 0x8ee   :  { %3826 = vmatmul.mubr.bf16.vlgmr.msra.gmra.mrb[24].mxu1 %v1730_v57  ;;  %v4103_v57 = vld [vmem:[%s5291_s0 + $0x8] sm:$0xff]  }
 0x8ef   :  { %3869 = vmatprep.mubr.msk.f32.mxu1 %vm4715_vm2, %v4714_v16 }
 0x9c1   :  { %v1836_v60 = vpop.f32.mrb[24].mxu1 }
 0x9c2   :  { %v1837_v61 = vadd.f32 %v3364_v59, %v1836_v60  ;;  %v3827_v62 = vpop.f32.mrb[25].mxu1  ;;  %v3388_v60 = vld [vmem:[#allocation24] ss:$0 sm:$0xff] }
 0x9c3   :  { %v1839_v63 = vpop.f32.mrb[26].mxu1 }
 0x9c4   :  { %v1840_v0 = vadd.f32 %v3364_v59, %v1839_v63  ;;  %v3828_v1 = vpop.f32.mrb[27].mxu1  ;;  %v1843_v4 = vadd.f32 %v1837_v61, %v5087_v2  ;;  %v4069_v2 = vld [vmem:[#allocation19 + $0x28] sm:$0xff]  }
 0x9c5   :  { %v3390_v61 = vld [vmem:[#allocation24 + $0x1] ss:$0 sm:$0xff] }
 0x9c6   :  { %v1844_v5 = vadd.f32 %v1840_v0, %v5089_v3  ;;  %v4070_v3 = vld [vmem:[#allocation19 + $0x30] sm:$0xff]  }
 0x9c8   :  { %v3977_v6 = vpack.c.bf16 %v1844_v5, %v1843_v4 }
 0x9ca   :  { %3978 = vmatpush3.bf16.msra.mxu0 %v3977_v6 }
 0x9cb   :  { %3979 = vmatprep.subr.bf16.mxu0 %v4716_v58 }
 0x9cd   :  { %3834 = vmatmul.mubr.msk.f32.vlgmr.msra.gmra.mrb[18].mxu0 %vm945_vm4, %v1845_v7 }
 0x9ce   :  { %3981 = vmatpush3.bf16.msra.mxu0 %v3977_v6  ;;  %3840 = vmatprep.mubr.msk.f32.mxu0 %vm4715_vm2, %v4714_v16  ;;  %v3392_v6 = vld [vmem:[#allocation24 + $0x2] ss:$0 sm:$0xff] }
 0x9cf   :  { %3843 = vmatprep.subr.bf16.mxu0 %v4714_v16 }
 0x9d1   :  { %3841 = vmatmul.mubr.msk.f32.vlgmr.msra.gmra.mrb[24].mxu0 %vm945_vm4, %v3374_v8 }
 0x9d2   :  { %3844 = vmatpush3.bf16.msra.mxu0 %v4068_v9  ;;  %3851 = vmatprep.mubr.msk.bf16.mxu0 %vm4715_vm2, %v4714_v16 }
 0x9d3   :  { %3845 = vmatprep.subr.bf16.mxu0 %v4714_v16 }
 0x9d6   :  { %3846 = vmatpush3.bf16.msra.mxu0 %v4069_v2 }
 0x9d7   :  { %3847 = vmatprep.subr.bf16.mxu0 %v4714_v16 }
 0x9da   :  { %3848 = vmatpush3.bf16.msra.mxu0 %v4070_v3  ;;  %v3394_v3 = vld [vmem:[#allocation24 + $0x3] ss:$0 sm:$0xff] }
 0x9db   :  { %3849 = vmatprep.subr.bf16.mxu0 %v4714_v16 }
 0x9de   :  { %3850 = vmatpush3.bf16.msra.mxu0 %v4071_v10  ;;  %v3396_v10 = vld [vmem:[#allocation24 + $0x4] ss:$0 sm:$0xff] }
 0x9df   :  { %3855 = vmatprep.subr.bf16.mxu0 %v4714_v16 }
 0xaa0   :  { %v1915_v11 = vpop.f32.mrb[18].mxu0 }
 0xaa1   :  { %v3835_v12 = vpop.f32.mrb[19].mxu0  ;;  %v1919_v21 = vpack.c.bf16 %v1915_v11, %v1915_v11 }
 0xaa4   :  { %v1999_v13 = vpop.f32.mrb[24].mxu0 }
 0xaa5   :  { %v2003_v15 = vpack.c.bf16 %v1999_v13, %v1999_v13  ;;  %v3842_v17 = vpop.f32.mrb[25].mxu0 }
 0xaa7   :  { %3852 = vmatmul.mubr.msk.bf16.vlgmr.msra.gmra.mrb[28].mxu0 %vm395_vm0, %v2003_v15 }
 0xaa8   :  { %3856 = vmatpush3.bf16.msra.mxu0 %v4072_v14  ;;  %3863 = vmatprep.mubr.msk.bf16.mxu0 %vm4715_vm2, %v4714_v16 }
 0xaa9   :  { %3857 = vmatprep.subr.bf16.mxu0 %v4714_v16 }
 0xaac   :  { %3858 = vmatpush3.bf16.msra.mxu0 %v4073_v18  ;;  %v3397_v18 = vld [vmem:[#allocation25] ss:$0 sm:$0xff] }
 0xaad   :  { %3859 = vmatprep.subr.bf16.mxu0 %v4714_v16 }
 0xab0   :  { %3860 = vmatpush3.bf16.msra.mxu0 %v4074_v19 }
 0xab1   :  { %3861 = vmatprep.subr.bf16.mxu0 %v4714_v16 }
 0xab4   :  { %3862 = vmatpush3.bf16.msra.mxu0 %v4075_v20 }
 0xab5   :  { %3887 = vmatprep.subr.mxu0 %v4714_v16 }
 0xab7   :  { %3864 = vmatmul.mubr.msk.bf16.vlgmr.msra.gmra.mrb[32].mxu0 %vm395_vm0, %v1919_v21 }
 0xab8   :  { %3889 = vmatprep.mubr.msk.f32.mxu0 %vm4715_vm2, %v4714_v16 }
 0xb7a   :  { %v2074_v22 = vpop.f32.mrb[28].mxu0 }
 0xb7b   :  { %v3853_v23 = vpop.f32.mrb[29].mxu0 }
 0xb7c   :  { %v2077_v24 = vpop.f32.mrb[30].mxu0  ;;  %v4105_v23 = vld [vmem:[%s5291_s0 + $0x10] sm:$0xff]  }
 0xb7d   :  { %v3854_v25 = vpop.f32.mrb[31].mxu0  ;;  %v4106_v24 = vld [vmem:[%s5291_s0 + $0x58] sm:$0xff]  }
 0xb7e   :  { %v4107_v25 = vld [vmem:[%s5291_s0 + $0x18] sm:$0xff]  }
 0xb8a   :  { %v2141_v26 = vpop.f32.mrb[32].mxu0 }
 0xb8b   :  { %v2142_v28 = vadd.f32 %v2141_v26, %v2074_v22  ;;  %v3865_v29 = vpop.f32.mrb[33].mxu0  ;;  %v4104_v22 = vld [vmem:[%s5291_s0 + $0x50] sm:$0xff]   ;;  %v4108_v26 = vld [vmem:[%s5291_s0 + $0x60] sm:$0xff]  }
 0xb8c   :  { %v2144_v30 = vpop.f32.mrb[34].mxu0  ;;  %v4111_v29 = vld [vmem:[%s5291_s0 + $0x28] sm:$0xff]  }
 0xb8d   :  { %v5189_v31 = vadd.f32 %v3386_v27, %v2142_v28  ;;  %v3866_v32 = vpop.f32.mrb[35].mxu0  ;;  %v4109_v27 = vld [vmem:[%s5291_s0 + $0x20] sm:$0xff]   ;;  %v4110_v28 = vld [vmem:[%s5291_s0 + $0x68] sm:$0xff]   ;;  %v4112_v30 = vld [vmem:[%s5291_s0 + $0x70] sm:$0xff]  }
 0xb8e   :  { %v4113_v32 = vld [vmem:[%s5291_s0 + $0x30] sm:$0xff]  }
 0xb8f   :  { %3868 = vmatpush3.msra.mxu1 %v5189_v31  ;;  %3888 = vmatpush3.msra.mxu0 %v5189_v31 }
 0xb90   :  { %3870 = vmatmul.mubr.msk.f32.vlgmr.msra.gmra.mrb[28].mxu1 %vm2156_vm5, %v2155_v33  ;;  %3872 = vmatprep.subr.mxu1 %v4714_v16  ;;  %v4114_v33 = vld [vmem:[%s5291_s0 + $0x78] sm:$0xff]  }
 0xb91   :  { %3873 = vmatpush3.msra.mxu1 %v5189_v31  ;;  %3874 = vmatprep.mubr.msk.f32.mxu1 %vm4715_vm2, %v4714_v16 }
 0xb92   :  { %3877 = vmatprep.subr.mxu1 %v4714_v16  ;;  %3890 = vmatmul.mubr.msk.f32.vlgmr.msra.gmra.mrb[26].mxu0 %vm2156_vm5, %v2494_v34  ;;  %v4115_v34 = vld [vmem:[%s5291_s0 + $0x38] sm:$0xff]  }
 0xb93   :  { %3586 = vmatprep.subr.bf16.mxu0 %v4100_v54 }
 0xb94   :  { %3875 = vmatmul.mubr.msk.f32.vlgmr.msra.gmra.mrb[30].mxu1 %vm2156_vm5, %v2239_v35  ;;  %3587 = vmatpush3.bf16.msra.mxu0 %v4101_v55  ;;  %v4116_v35 = vld [vmem:[#allocation28] ss:$8 sps:$4 sm:$0xff]  }
 0xb95   :  { %3878 = vmatpush3.msra.mxu1 %v5189_v31  ;;  %3879 = vmatprep.mubr.msk.f32.mxu1 %vm4715_vm2, %v4714_v16 }
 0xb96   :  { %3882 = vmatprep.subr.mxu1 %v4714_v16  ;;  %3588 = vmatprep.subr.bf16.mxu0 %v4102_v56 }
 0xb98   :  { %3880 = vmatmul.mubr.msk.f32.vlgmr.msra.gmra.mrb[32].mxu1 %vm2156_vm5, %v2324_v36  ;;  %3589 = vmatpush3.bf16.msra.mxu0 %v4103_v57  ;;  %v4118_v36 = vld [vmem:[#allocation28 + $0x4] ss:$8 sps:$4 sm:$0xff]  }
 0xb99   :  { %3883 = vmatpush3.msra.mxu1 %v5189_v31  ;;  %3884 = vmatprep.mubr.msk.f32.mxu1 %vm4715_vm2, %v4714_v16  ;;  %v4087_v16 = vld [vmem:[%s5290_s24 + $0x34] ss:$8 sps:$4 sm:$0xff]  }
 0xb9a   :  { %2695 = vmatprep.subr.bf16.mxu1 %v4078_v37  ;;  %3590 = vmatprep.subr.bf16.mxu0 %v4104_v22  ;;  %v4121_v37 = vld [vmem:[#allocation28 + $0x14] ss:$8 sps:$4 sm:$0xff]  }
 0xb9c   :  { %3885 = vmatmul.mubr.msk.f32.vlgmr.msra.gmra.mrb[34].mxu1 %vm2156_vm5, %v2409_v38  ;;  %3591 = vmatpush3.bf16.msra.mxu0 %v4105_v23  ;;  %v4119_v38 = vld [vmem:[#allocation28 + $0x10] ss:$8 sps:$4 sm:$0xff]  }
 0xb9d   :  { %2696 = vmatpush1.bf16.msra.mxu1 %v4076_v39  ;;  %2727 = vmatprep.mubr.bf16.mxu1 %v4717_v53  ;;  %v4124_v39 = vld [vmem:[#allocation28 + $0x24] ss:$8 sps:$4 sm:$0xff]  }
 0xb9e   :  { %2697 = vmatprep.subr.bf16.mxu1 %v4081_v40  ;;  %3592 = vmatprep.subr.bf16.mxu0 %v4106_v24  ;;  %v4122_v40 = vld [vmem:[#allocation28 + $0x20] ss:$8 sps:$4 sm:$0xff]   ;;  %v4144_v24 = vld [vmem:[#allocation31 + $0x50] sm:$0xff]  }
 0xba0   :  { %3593 = vmatpush3.bf16.msra.mxu0 %v4107_v25  ;;  %v4145_v25 = vld [vmem:[#allocation31 + $0x10] sm:$0xff]  }
 0xba1   :  { %2698 = vmatpush1.bf16.msra.mxu1 %v4079_v41  ;;  %3594 = vmatprep.subr.bf16.mxu0 %v4108_v26  ;;  %v4127_v41 = vld [vmem:[#allocation28 + $0x34] ss:$8 sps:$4 sm:$0xff]  }
 0xba2   :  { %2699 = vmatprep.subr.bf16.mxu1 %v4084_v42  ;;  %v4125_v42 = vld [vmem:[#allocation28 + $0x30] ss:$8 sps:$4 sm:$0xff]  }
 0xba3   :  { %v4146_v26 = vld [vmem:[#allocation31 + $0x58] sm:$0xff]  }
 0xba4   :  { %3595 = vmatpush3.bf16.msra.mxu0 %v4109_v27  ;;  %v4147_v27 = vld [vmem:[#allocation31 + $0x18] sm:$0xff]  }
 0xba5   :  { %2700 = vmatpush1.bf16.msra.mxu1 %v4082_v43  ;;  %3596 = vmatprep.subr.bf16.mxu0 %v4110_v28  ;;  %v4130_v43 = vld [vmem:[#allocation28 + $0x44] ss:$8 sps:$4 sm:$0xff]  }
 0xba6   :  { %2701 = vmatprep.subr.bf16.mxu1 %v4087_v16  ;;  %v4128_v16 = vld [vmem:[#allocation28 + $0x40] ss:$8 sps:$4 sm:$0xff]  }
 0xba7   :  { %v4148_v28 = vld [vmem:[#allocation31 + $0x60] sm:$0xff]  }
 0xba8   :  { %3597 = vmatpush3.bf16.msra.mxu0 %v4111_v29  ;;  %v4149_v29 = vld [vmem:[#allocation31 + $0x20] sm:$0xff]  }
 0xba9   :  { %2702 = vmatpush1.bf16.msra.mxu1 %v4085_v44  ;;  %3598 = vmatprep.subr.bf16.mxu0 %v4112_v30  ;;  %v4133_v44 = vld [vmem:[#allocation28 + $0x54] ss:$8 sps:$4 sm:$0xff]   ;;  %v4150_v30 = vld [vmem:[#allocation31 + $0x68] sm:$0xff]  }
 0xbaa   :  { %2703 = vmatprep.subr.bf16.mxu1 %v4090_v45  ;;  %v4131_v45 = vld [vmem:[#allocation28 + $0x50] ss:$8 sps:$4 sm:$0xff]  }
 0xbac   :  { %3599 = vmatpush3.bf16.msra.mxu0 %v4113_v32  ;;  %v4151_v32 = vld [vmem:[#allocation31 + $0x28] sm:$0xff]  }
 0xbad   :  { %2704 = vmatpush1.bf16.msra.mxu1 %v4088_v46  ;;  %3600 = vmatprep.subr.bf16.mxu0 %v4114_v33  ;;  %v2605_v46 = vlaneseq  ;;  %v4152_v33 = vld [vmem:[#allocation31 + $0x70] sm:$0xff]  }
 0xbae   :  { %2705 = vmatprep.subr.bf16.mxu1 %v4093_v47 }
 0xbaf   :  { %v5242_v47 = vshrl.u32 %v2605_v46, 7 }
 0xbb0   :  { %3601 = vmatpush3.bf16.msra.mxu0 %v4115_v34  ;;  %v4153_v34 = vld [vmem:[#allocation31 + $0x30] sm:$0xff]  }
 0xbb1   :  { %2706 = vmatpush1.bf16.msra.mxu1 %v4091_v48  ;;  %v2607_v48 = vsub.s32 0, %v5242_v47 }
 0xbb2   :  { %2707 = vmatprep.subr.bf16.mxu1 %v4096_v49  ;;  %v2603_v49 = vld [vmem:[%s5292_s25] sm:$0x3] }
 0xbb5   :  { %2708 = vmatpush1.bf16.msra.mxu1 %v4094_v50  ;;  %v2611_v50 = vsub.s32 1, %v5242_v47 }
 0xbb6   :  { %2709 = vmatprep.subr.bf16.mxu1 %v4099_v51  ;;  %v2608_v51 = vrot.slane %v2603_v49, %v2607_v48 }
 0xbb9   :  { %2710 = vmatpush1.bf16.msra.mxu1 %v4097_v52  ;;  %v2612_v52 = vrot.slane %v2603_v49, %v2611_v50 }
 0xbba   :  { %3032 = vmatprep.subr.bf16.mxu1 %v4118_v36  ;;  %v4155_v36 = vld [vmem:[#allocation31 + $0x38] sm:$0xff]  }
 0xc63   :  { %v2226_v58 = vpop.f32.mrb[28].mxu1 }
 0xc64   :  { %v3871_v59 = vpop.f32.mrb[29].mxu1  ;;  %v2237_v1 = vmul.f32 %v3388_v60, %v2226_v58 }
 0xc65   :  { %v2564_v62 = vpop.f32.mrb[26].mxu0 }
 0xc66   :  { %v3891_v63 = vpop.f32.mrb[27].mxu0  ;;  %v2576_v14 = vmul.f32 %v3396_v10, %v2564_v62  ;;  %v4137_v10 = vld [vmem:[#allocation28 + $0x70] ss:$8 sps:$4 sm:$0xff]  }
 0xc67   :  { %v2309_v0 = vpop.f32.mrb[30].mxu1 }
 0xc68   :  { %v2321_v4 = vmul.f32 %v3390_v61, %v2309_v0  ;;  %v3876_v5 = vpop.f32.mrb[31].mxu1 }
 0xc6a   :  { %v2322_v7 = vadd.f32 %v2321_v4, %v2237_v1 }
 0xc6b   :  { %v2394_v8 = vpop.f32.mrb[32].mxu1 }
 0xc6c   :  { %v2406_v9 = vmul.f32 %v3392_v6, %v2394_v8  ;;  %v3881_v2 = vpop.f32.mrb[33].mxu1 }
 0xc6d   :  { %v4134_v2 = vld [vmem:[#allocation28 + $0x60] ss:$8 sps:$4 sm:$0xff]  }
 0xc6e   :  { %v2407_v11 = vadd.f32 %v2406_v9, %v2322_v7  ;;  %v4136_v9 = vld [vmem:[#allocation28 + $0x64] ss:$8 sps:$4 sm:$0xff]  }
 0xc6f   :  { %v2479_v12 = vpop.f32.mrb[34].mxu1 }
 0xc70   :  { %v2491_v13 = vmul.f32 %v3394_v3, %v2479_v12  ;;  %v3886_v15 = vpop.f32.mrb[35].mxu1  ;;  %v4139_v3 = vld [vmem:[#allocation28 + $0x74] ss:$8 sps:$4 sm:$0xff]   ;;  %v4141_v12 = vld [vmem:[#allocation31] sm:$0xff]  }
 0xc72   :  { %v2492_v17 = vadd.f32 %v2491_v13, %v2407_v11  ;;  %v4140_v11 = vld [vmem:[#allocation31 + $0x40] sm:$0xff]   ;;  %v4142_v13 = vld [vmem:[#allocation31 + $0x48] sm:$0xff]  }
 0xc73   :  { %3608 = vmatprep.subr.bf16.mxu0 %v4140_v11 }
 0xc74   :  { %v2577_v19 = vadd.f32 %v2576_v14, %v2492_v17  ;;  %v4143_v14 = vld [vmem:[#allocation31 + $0x8] sm:$0xff]   ;;  %v3414_v17 = vld [vmem:[#allocation27] ss:$0 sm:$0xff] }
 0xc76   :  { %v2585_v20 = vadd.f32 %v3397_v18, %v2577_v19 }
 0xc78   :  { %v2586_v21 = vpack.c.bf16 %v2585_v20, %v2585_v20 }
 0xc7a   :  { %2728 = vmatmul.mubr.bf16.vlgmr.msra.gmra.mrb[36].mxu1 %v2586_v21 }
 0xc7b   :  { %3064 = vmatprep.mubr.bf16.mxu1 %v4717_v53  ;;  %3033 = vmatpush1.bf16.msra.mxu1 %v4116_v35  ;;  %v4154_v35 = vld [vmem:[#allocation31 + $0x78] sm:$0xff]  }
 0xc7c   :  { %3034 = vmatprep.subr.bf16.mxu1 %v4121_v37  ;;  %v2940_v37 = vld [vmem:[#allocation30] sm:$0x3] }
 0xc7f   :  { %3035 = vmatpush1.bf16.msra.mxu1 %v4119_v38  ;;  %v2945_v38 = vrot.slane %v2940_v37, %v2607_v48 }
 0xc80   :  { %3036 = vmatprep.subr.bf16.mxu1 %v4124_v39  ;;  %v2949_v39 = vrot.slane %v2940_v37, %v2611_v50 }
 0xc83   :  { %3037 = vmatpush1.bf16.msra.mxu1 %v4122_v40 }
 0xc84   :  { %3038 = vmatprep.subr.bf16.mxu1 %v4127_v41 }
 0xc87   :  { %3039 = vmatpush1.bf16.msra.mxu1 %v4125_v42 }
 0xc88   :  { %3040 = vmatprep.subr.bf16.mxu1 %v4130_v43 }
 0xc8b   :  { %3041 = vmatpush1.bf16.msra.mxu1 %v4128_v16 }
 0xc8c   :  { %3042 = vmatprep.subr.bf16.mxu1 %v4133_v44 }
 0xc8f   :  { %3043 = vmatpush1.bf16.msra.mxu1 %v4131_v45 }
 0xc90   :  { %3044 = vmatprep.subr.bf16.mxu1 %v4136_v9 }
 0xc93   :  { %3045 = vmatpush1.bf16.msra.mxu1 %v4134_v2 }
 0xc94   :  { %3046 = vmatprep.subr.bf16.mxu1 %v4139_v3 }
 0xc97   :  { %3047 = vmatpush1.bf16.msra.mxu1 %v4137_v10 }
 0xd4d   :  { %v2729_v53 = vpop.f32.mrb[36].mxu1 }
 0xd4e   :  { %v2730_v54 = vadd.f32 %v2729_v53, %v2608_v51  ;;  %v2731_v55 = vpop.f32.mrb[37].mxu1 }
 0xd4f   :  { %v2732_v56 = vadd.f32 %v2731_v55, %v2612_v52  ;;  %v2733_v57 = vpop.f32.mrb[38].mxu1 }
 0xd50   :  { %v2738_v58 = vmul.f32 0.70710677, %v2730_v54  ;;  %v2734_v59 = vpop.f32.mrb[39].mxu1  ;;  %v2736_v63 = vmul.f32 0.5, %v2730_v54 }
 0xd51   :  { %v2739_v60 = vmul.f32 0.70710677, %v2732_v56  ;;  %v2737_v1 = vmul.f32 0.5, %v2732_v56 }
 0xd52   :  { %4164 = verf.f32 %v2738_v58  ;;  %v3447_v58 = vld [vmem:[#allocation33] ss:$0 sm:$0xff] }
 0xd53   :  { %4166 = verf.f32 %v2739_v60 }
 0xd5c   :  { %v4165_v61 = vpop.eup %4164 }
 0xd5d   :  { %v4167_v62 = vpop.eup %4166  ;;  %v2742_v0 = vadd.f32 1.0, %v4165_v61 }
 0xd5e   :  { %v2743_v4 = vadd.f32 1.0, %v4167_v62 }
 0xd5f   :  { %v2744_v5 = vmul.f32 %v2742_v0, %v2736_v63 }
 0xd60   :  { %v2745_v6 = vmul.f32 %v2743_v4, %v2737_v1 }
 0xd61   :  { %v2746_v8 = vpack.c.bf16 %v2744_v5, %v2744_v5 }
 0xd62   :  { %v2747_v7 = vpack.c.bf16 %v2745_v6, %v2745_v6 }
 0xd64   :  { %2915 = vmatprep.mubr.bf16.mxu0 %v2747_v7 }
 0xd65   :  { %2916 = vmatmul.mubr.bf16.vlgmr.msra.gmra.mrb[36].mxu0 %v2746_v8 }
 0xd66   :  { %3609 = vmatpush3.bf16.msra.mxu0 %v4141_v12 }
 0xd67   :  { %3610 = vmatprep.subr.bf16.mxu0 %v4142_v13 }
 0xd6a   :  { %3611 = vmatpush3.bf16.msra.mxu0 %v4143_v14 }
 0xd6b   :  { %3612 = vmatprep.subr.bf16.mxu0 %v4144_v24 }
 0xd6e   :  { %3613 = vmatpush3.bf16.msra.mxu0 %v4145_v25 }
 0xd6f   :  { %3614 = vmatprep.subr.bf16.mxu0 %v4146_v26 }
 0xd72   :  { %3615 = vmatpush3.bf16.msra.mxu0 %v4147_v27 }
 0xd73   :  { %3616 = vmatprep.subr.bf16.mxu0 %v4148_v28 }
 0xd76   :  { %3617 = vmatpush3.bf16.msra.mxu0 %v4149_v29 }
 0xd77   :  { %3618 = vmatprep.subr.bf16.mxu0 %v4150_v30 }
 0xd7a   :  { %3619 = vmatpush3.bf16.msra.mxu0 %v4151_v32 }
 0xd7b   :  { %3620 = vmatprep.subr.bf16.mxu0 %v4152_v33 }
 0xd7e   :  { %3621 = vmatpush3.bf16.msra.mxu0 %v4153_v34 }
 0xd7f   :  { %3622 = vmatprep.subr.bf16.mxu0 %v4154_v35 }
 0xd82   :  { %3623 = vmatpush3.bf16.msra.mxu0 %v4155_v36 }
 0xe38   :  { %v3602_v15 = vpop.f32.mrb[36].mxu0 }
 0xe39   :  { %v3603_v18 = vpop.f32.mrb[37].mxu0 }
 0xe3a   :  { %v3604_v19 = vadd.f32 %v3603_v18, %v3602_v15  ;;  %v3605_v20 = vpop.f32.mrb[38].mxu0 }
 0xe3b   :  { %v3606_v21 = vpop.f32.mrb[39].mxu0 }
 0xe3c   :  { %v2918_v22 = vadd.f32 %v3604_v19, %v3414_v17 }
 0xe3e   :  { %v2923_v23 = vpack.c.bf16 %v2918_v22, %v2918_v22 }
 0xe40   :  { %3065 = vmatmul.mubr.bf16.vlgmr.msra.gmra.mrb[40].mxu1 %v2923_v23 }
 0xf13   :  { %v3066_v40 = vpop.f32.mrb[40].mxu1 }
 0xf14   :  { %v3067_v41 = vadd.f32 %v3066_v40, %v2945_v38  ;;  %v3068_v42 = vpop.f32.mrb[41].mxu1 }
 0xf15   :  { %v3069_v43 = vadd.f32 %v3068_v42, %v2949_v39  ;;  %v3070_v16 = vpop.f32.mrb[42].mxu1 }
 0xf16   :  { %v3075_v44 = vmul.f32 0.70710677, %v3067_v41  ;;  %v3071_v45 = vpop.f32.mrb[43].mxu1  ;;  %v3073_v52 = vmul.f32 0.5, %v3067_v41 }
 0xf17   :  { %v3076_v46 = vmul.f32 0.70710677, %v3069_v43  ;;  %v3074_v54 = vmul.f32 0.5, %v3069_v43 }
 0xf18   :  { %4168 = verf.f32 %v3075_v44 }
 0xf19   :  { %4170 = verf.f32 %v3076_v46 }
 0xf22   :  { %v4169_v49 = vpop.eup %4168 }
 0xf23   :  { %v4171_v51 = vpop.eup %4170  ;;  %v3079_v53 = vadd.f32 1.0, %v4169_v49 }
 0xf24   :  { %v3080_v48 = vadd.f32 1.0, %v4171_v51 }
 0xf25   :  { %v3081_v55 = vmul.f32 %v3079_v53, %v3073_v52 }
 0xf26   :  { %v3082_v47 = vmul.f32 %v3080_v48, %v3074_v54 }
 0xf27   :  { %v3083_v56 = vpack.c.bf16 %v3081_v55, %v3081_v55 }
 0xf28   :  { %v3084_v50 = vpack.c.bf16 %v3082_v47, %v3082_v47 }
 0xf2a   :  { %3252 = vmatprep.mubr.bf16.mxu0 %v3084_v50 }
 0xf2b   :  { %3253 = vmatmul.mubr.bf16.vlgmr.msra.gmra.mrb[40].mxu0 %v3083_v56 }
 0xffe   :  { %v3624_v57 = vpop.f32.mrb[40].mxu0 }
 0xfff   :  { %v3625_v59 = vpop.f32.mrb[41].mxu0 }
0x1000   :  { %v3626_v60 = vadd.f32 %v3625_v59, %v3624_v57  ;;  %v3627_v61 = vpop.f32.mrb[42].mxu0 }
0x1001   :  { %v3628_v62 = vpop.f32.mrb[43].mxu0 }
0x1002   :  { %v3255_v63 = vadd.f32 %v3626_v60, %v3447_v58 }
0x1004   :  { %v3260_v0 = vadd.f32 %v3255_v63, %v5189_v31 }
0x1006   :  { %3261 = vst [vmem:[%s4871_s12] sm:$0xff] %v3260_v0 }
0x1007   :  { %3266 = vsyncpa [#allocation3], 1 }
0x1008   :  { %3267 = vsyncpa [#allocation5], 1 }
0x1009   :  { %3268 = vsyncpa [#allocation8], 1 }
0x100a   :  { %3269 = vsyncpa [#allocation11], 1 }
0x100b   :  { %3270 = vsyncpa [#allocation14], 1 }
0x100c   :  { %3271 = vsyncpa [#allocation17], 1 }
0x100d   :  { %3272 = vsyncpa [#allocation20], 1 }
0x100e   :  { %3273 = vsyncpa [#allocation23], 1 }
0x100f   :  { %3274 = vsyncpa [#allocation26], 1 }
0x1010   :  { %3275 = vsyncpa [#allocation29], 1 }
0x1011   :  { %3276 = vsyncpa [#allocation32], 1 }

</bundles_post_ra>
